<compile_context>
chip_gen: v5e
topology: v5e:2x2
jax: 0.10.0
libtpu: 0.0.40
codegen_flags: <defaults>
</compile_context>

<pallas_src>
import functools
import math

import jax
import jax.numpy as jnp
from jax import lax
from jax.experimental import pallas as pl
from jax.experimental.pallas import tpu as pltpu


# MXU operand / HBM activation storage dtype.  fp32 accumulation is always
# used; set both to jnp.float32 for strict fp32 parity with PyTorch.
MXU_DTYPE = jnp.bfloat16
ACT_DTYPE = jnp.bfloat16


# ---------------------------------------------------------------------------
# hardware-aware helpers
# ---------------------------------------------------------------------------
@functools.lru_cache(maxsize=None)
def _vmem_capacity():
    try:
        return int(pltpu.get_tpu_info().vmem_capacity_bytes)
    except Exception:
        return None


def _compiler_params(dims):
    cap = _vmem_capacity()
    if cap is None:
        return pltpu.CompilerParams(dimension_semantics=dims)
    # ~3/4 of physical VMEM: ~96 MiB on v5e/v6e (128 MiB), ~48 MiB on v7x (64 MiB)
    return pltpu.CompilerParams(dimension_semantics=dims,
                                vmem_limit_bytes=min((cap * 3) // 4, 100 << 20))


@functools.lru_cache(maxsize=None)
def _row_cap():
    cap = _vmem_capacity()
    if cap is not None and cap <= (64 << 20):   # v7x-class core: 64 MiB VMEM
        return 256
    return 512


@functools.lru_cache(maxsize=None)
def _buffered_weights():
    """Probe once whether pipeline_mode=pl.Buffered(1) lowers on this build.
    Single-buffering grid-invariant weight blocks halves their VMEM cost."""
    if not hasattr(pl, "Buffered"):
        return False
    try:
        def k(x_ref, o_ref):
            o_ref[...] = x_ref[...]
        f = pl.pallas_call(
            k, grid=(2,),
            in_specs=[pl.BlockSpec((8, 128), lambda i: (0, 0),
                                   pipeline_mode=pl.Buffered(1))],
            out_specs=pl.BlockSpec((8, 128), lambda i: (0, 0)),
            out_shape=jax.ShapeDtypeStruct((8, 128), jnp.float32))
        jax.block_until_ready(f(jnp.zeros((8, 128), jnp.float32)))
        return True
    except Exception:
        return False


def _const_spec(shape):
    """BlockSpec for a grid-invariant operand (weights / biases / BN affine)."""
    index_map = lambda *_: (0,) * len(shape)
    if _buffered_weights():
        return pl.BlockSpec(shape, index_map, pipeline_mode=pl.Buffered(1))
    return pl.BlockSpec(shape, index_map)


def _round_up(n, m):
    return ((n + m - 1) // m) * m


def _row_tile(n, cap):
    """Largest multiple-of-8 divisor of n that is <= cap (or n itself if small).
    n is always a multiple of 8 here because sequences are padded first."""
    if n <= cap:
        return n
    t = cap - (cap % 8)
    while t >= 8:
        if n % t == 0:
            return t
        t -= 8
    return n


# ---------------------------------------------------------------------------
# elementwise math (fp32 on the VPU, exp/reciprocal on the EUP)
# ---------------------------------------------------------------------------
def _erf(x):
    # Abramowitz & Stegun 7.1.26 (|err| ~ 1.5e-7 before the approx reciprocal)
    p = 0.3275911
    a1, a2, a3, a4, a5 = (0.254829592, -0.284496736, 1.421413741,
                          -1.453152027, 1.061405429)
    ax = jnp.abs(x)
    t = pl.reciprocal(1.0 + p * ax, approx=True)   # EUP slot, not a VPU divide
    poly = ((((a5 * t + a4) * t + a3) * t + a2) * t + a1) * t
    y = 1.0 - poly * jnp.exp(-ax * ax)
    return jnp.where(x < 0.0, -y, y)


def _gelu(x):
    # exact (erf) gelu, matching torch.nn.functional.gelu default
    return 0.5 * x * (1.0 + _erf(x * 0.7071067811865476))


# ---------------------------------------------------------------------------
# Pallas kernels
# ---------------------------------------------------------------------------
def input_project(X, pe, w, b, scale):
    """((X @ w) + b) * sqrt(d_model) + pe, batch-first (B, S, D) bf16 output."""
    B, S, Fin = X.shape
    D = w.shape[1]
    ts = _row_tile(S, _row_cap())

    def kernel(x_ref, pe_ref, w_ref, b_ref, o_ref):
        y = jnp.dot(x_ref[0].astype(MXU_DTYPE), w_ref[...],
                    preferred_element_type=jnp.float32)
        o_ref[0] = ((y + b_ref[...]) * scale + pe_ref[...]).astype(o_ref.dtype)

    return pl.pallas_call(
        kernel,
        grid=(B, S // ts),
        in_specs=[
            pl.BlockSpec((1, ts, Fin), lambda bi, si: (bi, si, 0)),
            pl.BlockSpec((ts, D), lambda bi, si: (si, 0)),
            _const_spec((Fin, D)),
            _const_spec((1, D)),
        ],
        out_specs=pl.BlockSpec((1, ts, D), lambda bi, si: (bi, si, 0)),
        out_shape=jax.ShapeDtypeStruct((B, S, D), ACT_DTYPE),
        compiler_params=_compiler_params(("parallel", "parallel")),
    )(X, pe, w, b)


def qkv_project(x, norm, wq, bq, wkv, bkv):
    """Fused Q and K|V projections with the pending BatchNorm normalize fused in
    as a prologue.  x: (N, D) bf16; norm: None or ((1,D) scale, (1,D) shift) f32.
    The 1/sqrt(head_dim) attention scale is pre-folded into wq / bq."""
    N, D = x.shape
    tm = _row_tile(N, _row_cap())
    has_norm = norm is not None

    def kernel(*refs):
        if has_norm:
            (x_ref, sc_ref, sh_ref, wq_ref, bq_ref, wkv_ref, bkv_ref,
             q_ref, kv_ref) = refs
        else:
            x_ref, wq_ref, bq_ref, wkv_ref, bkv_ref, q_ref, kv_ref = refs
        xv = x_ref[...].astype(jnp.float32)
        if has_norm:
            xv = xv * sc_ref[...] + sh_ref[...]
        xm = xv.astype(MXU_DTYPE)
        q = jnp.dot(xm, wq_ref[...], preferred_element_type=jnp.float32) + bq_ref[...]
        kv = jnp.dot(xm, wkv_ref[...], preferred_element_type=jnp.float32) + bkv_ref[...]
        q_ref[...] = q.astype(q_ref.dtype)
        kv_ref[...] = kv.astype(kv_ref.dtype)

    inputs = [x]
    in_specs = [pl.BlockSpec((tm, D), lambda i: (i, 0))]
    if has_norm:
        inputs += [norm[0], norm[1]]
        in_specs += [_const_spec((1, D)), _const_spec((1, D))]
    inputs += [wq, bq, wkv, bkv]
    in_specs += [_const_spec((D, D)), _const_spec((1, D)),
                 _const_spec((D, 2 * D)), _const_spec((1, 2 * D))]

    return pl.pallas_call(
        kernel,
        grid=(N // tm,),
        in_specs=in_specs,
        out_specs=[pl.BlockSpec((tm, D), lambda i: (i, 0)),
                   pl.BlockSpec((tm, 2 * D), lambda i: (i, 0))],
        out_shape=(jax.ShapeDtypeStruct((N, D), ACT_DTYPE),
                   jax.ShapeDtypeStruct((N, 2 * D), ACT_DTYPE)),
        compiler_params=_compiler_params(("parallel",)),
    )(*inputs)


def attention(q, kv, neg_bias, n_heads):
    """softmax(q k^T + bias) v for all heads of one (batch, query-tile) per grid
    step.  q is pre-scaled (1/sqrt(Dh) folded into its projection).  Per-head
    results are written into an f32 VMEM accumulator slice (bounded live
    ranges, no concatenate), then stored once lane-dense.  Softmax
    normalization is deferred to an EUP reciprocal."""
    B, S, D = q.shape
    Dh = D // n_heads
    tq = _row_tile(S, 256)

    def kernel(q_ref, kv_ref, bias_ref, o_ref, acc_ref):
        qv = q_ref[0]            # (tq, D)  bf16, already scaled
        kvv = kv_ref[0]          # (S, 2D)  bf16
        bias = bias_ref[0]       # (1, S)   f32
        # TODO(synk): per-head lane slices (Dh < 128) are relayout copies; a
        # lane-aligned head packing would remove that hidden traffic.
        for h in range(n_heads):     # static unroll; each head dies before the next
            qh = qv[:, h * Dh:(h + 1) * Dh]
            kh = kvv[:, h * Dh:(h + 1) * Dh]
            vh = kvv[:, D + h * Dh:D + (h + 1) * Dh]
            s = lax.dot_general(qh, kh, (((1,), (1,)), ((), ())),
                                preferred_element_type=jnp.float32) + bias
            m = jnp.max(s, axis=-1, keepdims=True)
            p = jnp.exp(s - m)
            denom = jnp.sum(p, axis=-1, keepdims=True)
            o = jnp.dot(p.astype(MXU_DTYPE), vh,
                        preferred_element_type=jnp.float32)
            acc_ref[:, h * Dh:(h + 1) * Dh] = o * pl.reciprocal(denom, approx=True)
        o_ref[0] = acc_ref[...].astype(o_ref.dtype)

    return pl.pallas_call(
        kernel,
        grid=(B, S // tq),
        in_specs=[
            pl.BlockSpec((1, tq, D), lambda b, qi: (b, qi, 0)),
            pl.BlockSpec((1, S, 2 * D), lambda b, qi: (b, 0, 0)),
            pl.BlockSpec((1, 1, S), lambda b, qi: (b, 0, 0)),
        ],
        out_specs=pl.BlockSpec((1, tq, D), lambda b, qi: (b, qi, 0)),
        out_shape=jax.ShapeDtypeStruct((B, S, D), ACT_DTYPE),
        scratch_shapes=[pltpu.VMEM((tq, D), jnp.float32)],
        compiler_params=_compiler_params(("parallel", "parallel")),
    )(q, kv, neg_bias)


def proj_residual(x, w, b, add, add_norm):
    """y = x @ w + b + norm(add): attention output projection with the residual
    (and the residual's pending BatchNorm normalize) fused in."""
    N, D = x.shape
    Dout = w.shape[1]
    tm = _row_tile(N, _row_cap())
    has_norm = add_norm is not None

    def kernel(*refs):
        if has_norm:
            x_ref, w_ref, b_ref, a_ref, sc_ref, sh_ref, o_ref = refs
        else:
            x_ref, w_ref, b_ref, a_ref, o_ref = refs
        y = jnp.dot(x_ref[...], w_ref[...],
                    preferred_element_type=jnp.float32) + b_ref[...]
        a = a_ref[...].astype(jnp.float32)
        if has_norm:
            a = a * sc_ref[...] + sh_ref[...]
        o_ref[...] = (y + a).astype(o_ref.dtype)

    inputs = [x, w, b, add]
    in_specs = [pl.BlockSpec((tm, D), lambda i: (i, 0)),
                _const_spec((D, Dout)), _const_spec((1, Dout)),
                pl.BlockSpec((tm, Dout), lambda i: (i, 0))]
    if has_norm:
        inputs += [add_norm[0], add_norm[1]]
        in_specs += [_const_spec((1, Dout)), _const_spec((1, Dout))]

    return pl.pallas_call(
        kernel,
        grid=(N // tm,),
        in_specs=in_specs,
        out_specs=pl.BlockSpec((tm, Dout), lambda i: (i, 0)),
        out_shape=jax.ShapeDtypeStruct((N, Dout), ACT_DTYPE),
        compiler_params=_compiler_params(("parallel",)),
    )(*inputs)


def ffn_residual(x, norm, w1, b1, w2, b2):
    """xn = norm(x); y = gelu(xn @ w1 + b1) @ w2 + b2 + xn.  The (tm, dim_ff)
    intermediate lives only in VMEM/vregs; gelu runs in fp32."""
    N, D = x.shape
    Dff = w1.shape[1]
    tm = _row_tile(N, _row_cap())

    def kernel(x_ref, sc_ref, sh_ref, w1_ref, b1_ref, w2_ref, b2_ref, o_ref):
        xn = x_ref[...].astype(jnp.float32) * sc_ref[...] + sh_ref[...]
        t = jnp.dot(xn.astype(MXU_DTYPE), w1_ref[...],
                    preferred_element_type=jnp.float32) + b1_ref[...]
        t = _gelu(t)
        y = jnp.dot(t.astype(MXU_DTYPE), w2_ref[...],
                    preferred_element_type=jnp.float32) + b2_ref[...] + xn
        o_ref[...] = y.astype(o_ref.dtype)

    return pl.pallas_call(
        kernel,
        grid=(N // tm,),
        in_specs=[
            pl.BlockSpec((tm, D), lambda i: (i, 0)),
            _const_spec((1, D)), _const_spec((1, D)),
            _const_spec((D, Dff)), _const_spec((1, Dff)),
            _const_spec((Dff, D)), _const_spec((1, D)),
        ],
        out_specs=pl.BlockSpec((tm, D), lambda i: (i, 0)),
        out_shape=jax.ShapeDtypeStruct((N, D), ACT_DTYPE),
        compiler_params=_compiler_params(("parallel",)),
    )(x, norm[0], norm[1], w1, b1, w2, b2)


def output_project(x, norm, w, b):
    """y = gelu(norm(x)) @ w_out + b_out, fp32 output."""
    N, D = x.shape
    Fout = w.shape[1]
    tm = _row_tile(N, _row_cap())

    def kernel(x_ref, sc_ref, sh_ref, w_ref, b_ref, o_ref):
        xn = _gelu(x_ref[...].astype(jnp.float32) * sc_ref[...] + sh_ref[...])
        y = jnp.dot(xn.astype(MXU_DTYPE), w_ref[...],
                    preferred_element_type=jnp.float32) + b_ref[...]
        o_ref[...] = y.astype(o_ref.dtype)

    return pl.pallas_call(
        kernel,
        grid=(N // tm,),
        in_specs=[
            pl.BlockSpec((tm, D), lambda i: (i, 0)),
            _const_spec((1, D)), _const_spec((1, D)),
            _const_spec((D, Fout)), _const_spec((1, Fout)),
        ],
        out_specs=pl.BlockSpec((tm, Fout), lambda i: (i, 0)),
        out_shape=jax.ShapeDtypeStruct((N, Fout), jnp.float32),
        compiler_params=_compiler_params(("parallel",)),
    )(x, norm[0], norm[1], w, b)


def bn_stats(x, gamma, beta, count, valid=None, eps=1e-5):
    """BatchNorm1d batch statistics over `count` valid token rows -> per-channel
    affine (scale, shift) with norm(x) = x * scale + shift (biased variance,
    eps=1e-5).  Stats-only: the normalize itself is fused into consumer
    kernels, so this kernel only READS x (no (N, D) writeback).  The channel
    axis is tiled & "parallel" so the reduction shards across TensorCores when
    d_model is a multiple of 128."""
    N, D = x.shape
    tm = _row_tile(N, _row_cap())
    M = N // tm
    dc = 128 if (D % 128 == 0 and D > 128) else D
    C = D // dc
    inv_n = 1.0 / float(count)
    has_valid = valid is not None

    def kernel(*refs):
        if has_valid:
            x_ref, v_ref, g_ref, b_ref, sc_ref, sh_ref, sum_ref, ssq_ref = refs
        else:
            x_ref, g_ref, b_ref, sc_ref, sh_ref, sum_ref, ssq_ref = refs
        i = pl.program_id(1)

        @pl.when(i == 0)
        def _():
            sum_ref[...] = jnp.zeros_like(sum_ref)
            ssq_ref[...] = jnp.zeros_like(ssq_ref)

        xv = x_ref[...].astype(jnp.float32)
        if has_valid:
            xv = xv * v_ref[...]           # zero rows added only for tiling
        sum_ref[...] += jnp.sum(xv, axis=0, keepdims=True)
        ssq_ref[...] += jnp.sum(xv * xv, axis=0, keepdims=True)

        @pl.when(i == M - 1)
        def _():
            mean = sum_ref[...] * inv_n
            var = jnp.maximum(ssq_ref[...] * inv_n - mean * mean, 0.0)
            sc = g_ref[...] * lax.rsqrt(var + eps)
            sc_ref[...] = sc
            sh_ref[...] = b_ref[...] - mean * sc

    inputs = [x]
    in_specs = [pl.BlockSpec((tm, dc), lambda c, i: (i, c))]
    if has_valid:
        inputs.append(valid)
        in_specs.append(pl.BlockSpec((tm, 1), lambda c, i: (i, 0)))
    inputs += [gamma.reshape(1, D), beta.reshape(1, D)]
    in_specs += [pl.BlockSpec((1, dc), lambda c, i: (0, c)),
                 pl.BlockSpec((1, dc), lambda c, i: (0, c))]

    return pl.pallas_call(
        kernel,
        grid=(C, M),
        in_specs=in_specs,
        out_specs=[pl.BlockSpec((1, dc), lambda c, i: (0, c)),
                   pl.BlockSpec((1, dc), lambda c, i: (0, c))],
        out_shape=(jax.ShapeDtypeStruct((1, D), jnp.float32),
                   jax.ShapeDtypeStruct((1, D), jnp.float32)),
        scratch_shapes=[pltpu.VMEM((1, dc), jnp.float32),
                        pltpu.VMEM((1, dc), jnp.float32)],
        compiler_params=_compiler_params(("parallel", "arbitrary")),
    )(*inputs)


# ---------------------------------------------------------------------------
# parameters
# ---------------------------------------------------------------------------
def init_params(key, feat_dim, max_len, d_model, n_heads, num_layers, dim_ff):
    """fp32 parameters matching the PyTorch module's layout / init scheme."""
    def dense(k, din, dout):
        kw, kb = jax.random.split(k)
        lim = 1.0 / math.sqrt(din)
        return (jax.random.uniform(kw, (din, dout), jnp.float32, -lim, lim),
                jax.random.uniform(kb, (dout,), jnp.float32, -lim, lim))

    keys = jax.random.split(key, 2 + num_layers)
    params = {"d_model": d_model, "n_heads": n_heads}
    params["w_in"], params["b_in"] = dense(keys[0], feat_dim, d_model)
    params["w_out"], params["b_out"] = dense(keys[1], d_model, feat_dim)

    # FixedPositionalEncoding table
    pos = jnp.arange(max_len, dtype=jnp.float32)[:, None]
    div = jnp.exp(jnp.arange(0, d_model, 2, dtype=jnp.float32)
                  * (-math.log(10000.0) / d_model))
    pe = jnp.zeros((max_len, d_model), jnp.float32)
    pe = pe.at[:, 0::2].set(jnp.sin(pos * div))
    pe = pe.at[:, 1::2].set(jnp.cos(pos * div))
    params["pe"] = pe

    layers = []
    for l in range(num_layers):
        lk = jax.random.split(keys[2 + l], 6)
        layer = {}
        layer["wq"], layer["bq"] = dense(lk[0], d_model, d_model)
        layer["wk"], layer["bk"] = dense(lk[1], d_model, d_model)
        layer["wv"], layer["bv"] = dense(lk[2], d_model, d_model)
        layer["wo"], layer["bo"] = dense(lk[3], d_model, d_model)
        layer["w1"], layer["b1"] = dense(lk[4], d_model, dim_ff)
        layer["w2"], layer["b2"] = dense(lk[5], dim_ff, d_model)
        layer["g1"] = jnp.ones((d_model,), jnp.float32)
        layer["be1"] = jnp.zeros((d_model,), jnp.float32)
        layer["g2"] = jnp.ones((d_model,), jnp.float32)
        layer["be2"] = jnp.zeros((d_model,), jnp.float32)
        layers.append(layer)
    params["layers"] = layers
    return params


def prepare_params(p):
    """Kernel-ready parameters: bf16 weights (cast once in HBM), fused K|V
    projection, 1/sqrt(head_dim) folded into the Q projection (exact), fp32
    biases pre-reshaped to (1, dout)."""
    D, H = p["d_model"], p["n_heads"]
    qscale = 1.0 / math.sqrt(D // H)
    row = lambda v: v.reshape(1, -1).astype(jnp.float32)
    out = {"d_model": D, "n_heads": H, "pe": p["pe"],
           "w_in": p["w_in"].astype(MXU_DTYPE), "b_in": row(p["b_in"]),
           "w_out": p["w_out"].astype(MXU_DTYPE), "b_out": row(p["b_out"]),
           "layers": []}
    for l in p["layers"]:
        out["layers"].append({
            "wq": (l["wq"] * qscale).astype(MXU_DTYPE),
            "bq": row(l["bq"] * qscale),
            "wkv": jnp.concatenate([l["wk"], l["wv"]], axis=1).astype(MXU_DTYPE),
            "bkv": row(jnp.concatenate([l["bk"], l["bv"]], axis=0)),
            "wo": l["wo"].astype(MXU_DTYPE), "bo": row(l["bo"]),
            "w1": l["w1"].astype(MXU_DTYPE), "b1": row(l["b1"]),
            "w2": l["w2"].astype(MXU_DTYPE), "b2": row(l["b2"]),
            "g1": l["g1"], "be1": l["be1"], "g2": l["g2"], "be2": l["be2"],
        })
    return out


# ---------------------------------------------------------------------------
# forward pass (glue in JAX, hot paths in the Pallas kernels above)
# ---------------------------------------------------------------------------
def ts_transformer_forward(params, X, padding_masks):
    """X: (B, S, feat_dim) fp32, padding_masks: (B, S) bool (True = keep)."""
    B, S, F = X.shape
    D = params["d_model"]
    H = params["n_heads"]

    # Pad the sequence so every row/query tile divides evenly (no whole-array
    # fallback / VMEM blowups); padded positions are masked as attention keys
    # and excluded from BatchNorm statistics.
    pad_to = 64 if S > 64 else 8
    S_pad = _round_up(S, pad_to)
    if S_pad != S:
        X = jnp.pad(X, ((0, 0), (0, S_pad - S), (0, 0)))
        padding_masks = jnp.pad(padding_masks, ((0, 0), (0, S_pad - S)),
                                constant_values=False)
    N = B * S_pad

    pe = params["pe"]
    pe = pe[:S_pad] if pe.shape[0] >= S_pad else jnp.pad(
        pe, ((0, S_pad - pe.shape[0]), (0, 0)))

    # project_inp * sqrt(d_model) + pos_enc (pos-enc dropout = identity).
    # Internal layout is batch-first (B*S, D): per-batch attention blocks need
    # no HBM transposes and all reshapes below are metadata-only.
    h = input_project(X, pe, params["w_in"], params["b_in"],
                      math.sqrt(D)).reshape(N, D)

    # key_padding_mask = ~padding_masks -> additive bias, one (1, S) row per
    # batch, shared across heads and layers (never expanded in HBM).
    neg_bias = jnp.where(padding_masks, 0.0, -1e30).astype(jnp.float32)
    neg_bias = neg_bias.reshape(B, 1, S_pad)

    if S_pad != S:
        valid = jnp.zeros((B, S_pad), jnp.float32).at[:, :S].set(1.0).reshape(N, 1)
        count = B * S
    else:
        valid = None
        count = N

    # TODO(synk): all Dropout layers are identity (eval semantics); BatchNorm1d
    # uses batch statistics (the module's training-mode forward), running
    # buffers are not modelled/updated.
    norm = None   # pending (scale, shift) of the BatchNorm feeding this layer
    for layer in params["layers"]:
        # ---- self attention (fused Q / K|V projections, BN fused prologue) ----
        q, kv = qkv_project(h, norm, layer["wq"], layer["bq"],
                            layer["wkv"], layer["bkv"])
        ctx = attention(q.reshape(B, S_pad, D), kv.reshape(B, S_pad, 2 * D),
                        neg_bias, H)
        # output projection + residual (residual's pending BN normalize fused)
        h = proj_residual(ctx.reshape(N, D), layer["wo"], layer["bo"],
                          add=h, add_norm=norm)
        norm1 = bn_stats(h, layer["g1"], layer["be1"], count, valid)
        # ---- feed forward (gelu) + residual; BN1 normalize fused as prologue ----
        h = ffn_residual(h, norm1, layer["w1"], layer["b1"],
                         layer["w2"], layer["b2"])
        norm = bn_stats(h, layer["g2"], layer["be2"], count, valid)

    # final BN normalize + gelu -> output_layer (final dropout = identity)
    out = output_project(h, norm, params["w_out"], params["b_out"])   # (N, F) f32
    return out.reshape(B, S_pad, F)[:, :S, :]


# ---------------------------------------------------------------------------
if __name__ == "__main__":
    key = jax.random.PRNGKey(0)
    B, S, FEAT = 2, 8, 4
    D_MODEL, N_HEADS, N_LAYERS, D_FF, MAX_LEN = 32, 4, 2, 64, 16

    kp, kx = jax.random.split(key)
    raw_params = init_params(kp, FEAT, MAX_LEN, D_MODEL, N_HEADS, N_LAYERS, D_FF)
    params = prepare_params(raw_params)

    X = jax.random.normal(kx, (B, S, FEAT), jnp.float32)
    # keep everything in batch 0; pad the last two positions of batch 1
    padding_masks = jnp.ones((B, S), dtype=bool).at[1, 6:].set(False)

    _buffered_weights()   # prime the Buffered(1) feature probe outside tracing
    fwd = jax.jit(functools.partial(ts_transformer_forward, params))
    out = jax.block_until_ready(fwd(X, padding_masks))
    assert out.shape == (B, S, FEAT)
    assert bool(jnp.all(jnp.isfinite(out)))
    print("KERNEL_OK")
</pallas_src>

<mosaic_0001>
module attributes {stable_mosaic.version = 11 : i64} {
  func.func @k(%arg0: i32, %arg1: memref<8x128xf32, #tpu.memory_space<vmem>>, %arg2: memref<8x128xf32, #tpu.memory_space<vmem>>) attributes {dimension_semantics = [#tpu.dimension_semantics<arbitrary>], iteration_bounds = array<i64: 2>, scalar_prefetch = 0 : i64, scratch_operands = 0 : i64, tpu.core_type = #tpu.core_type<tc>, window_params = [{pipeline_mode = #tpu.pipeline_mode<synchronous>, transform_indices = @transform_0, window_bounds = array<i64: 8, 128>}, {pipeline_mode = #tpu.pipeline_mode<synchronous>, transform_indices = @transform_1, window_bounds = array<i64: 8, 128>}]} {
    %c0 = arith.constant 0 : index
    %c0_0 = arith.constant 0 : index
    %0 = vector.load %arg1[%c0, %c0_0] : memref<8x128xf32, #tpu.memory_space<vmem>>, vector<8x128xf32>
    %c0_1 = arith.constant 0 : index
    %c0_2 = arith.constant 0 : index
    %1 = vector.load %arg2[%c0_1, %c0_2] : memref<8x128xf32, #tpu.memory_space<vmem>>, vector<8x128xf32>
    tpu.vector_store %arg2[%c0_1, %c0_2], %0 {strides = array<i32>} : memref<8x128xf32, #tpu.memory_space<vmem>>, vector<8x128xf32>,
    return
  }
  func.func @transform_0(%arg0: i32) -> (i32, i32) {
    %c0_i32 = arith.constant 0 : i32
    %c0_i32_0 = arith.constant 0 : i32
    %c0_i32_1 = arith.constant 0 : i32
    return %c0_i32, %c0_i32_0 : i32, i32
  }
  func.func @transform_1(%arg0: i32) -> (i32, i32) {
    %c0_i32 = arith.constant 0 : i32
    %c0_i32_0 = arith.constant 0 : i32
    %c0_i32_1 = arith.constant 0 : i32
    return %c0_i32, %c0_i32_0 : i32, i32
  }
}

module attributes {stable_mosaic.version = 11 : i64} {
  func.func @kernel(%arg0: i32, %arg1: memref<16x32xbf16, #tpu.memory_space<vmem>>, %arg2: memref<32x32xbf16, #tpu.memory_space<vmem>>, %arg3: memref<1x32xf32, #tpu.memory_space<vmem>>, %arg4: memref<32x64xbf16, #tpu.memory_space<vmem>>, %arg5: memref<1x64xf32, #tpu.memory_space<vmem>>, %arg6: memref<16x32xbf16, #tpu.memory_space<vmem>>, %arg7: memref<16x64xbf16, #tpu.memory_space<vmem>>) attributes {dimension_semantics = [#tpu.dimension_semantics<parallel>], iteration_bounds = array<i64: 1>, scalar_prefetch = 0 : i64, scratch_operands = 0 : i64, tpu.core_type = #tpu.core_type<tc>, window_params = [{transform_indices = @transform_0, window_bounds = array<i64: 16, 32>}, {pipeline_mode = #tpu.pipeline_mode<synchronous>, transform_indices = @transform_1, window_bounds = array<i64: 32, 32>}, {pipeline_mode = #tpu.pipeline_mode<synchronous>, transform_indices = @transform_2, window_bounds = array<i64: 1, 32>}, {pipeline_mode = #tpu.pipeline_mode<synchronous>, transform_indices = @transform_3, window_bounds = array<i64: 32, 64>}, {pipeline_mode = #tpu.pipeline_mode<synchronous>, transform_indices = @transform_4, window_bounds = array<i64: 1, 64>}, {transform_indices = @transform_5, window_bounds = array<i64: 16, 32>}, {transform_indices = @transform_6, window_bounds = array<i64: 16, 64>}]} {
    %c0 = arith.constant 0 : index
    %c0_0 = arith.constant 0 : index
    %0 = vector.load %arg1[%c0, %c0_0] : memref<16x32xbf16, #tpu.memory_space<vmem>>, vector<16x32xbf16>
    %1 = arith.extf %0 : vector<16x32xbf16> to vector<16x32xf32>
    %2 = arith.truncf %1 : vector<16x32xf32> to vector<16x32xbf16>
    %c0_1 = arith.constant 0 : index
    %c0_2 = arith.constant 0 : index
    %3 = vector.load %arg2[%c0_1, %c0_2] : memref<32x32xbf16, #tpu.memory_space<vmem>>, vector<32x32xbf16>
    %cst = arith.constant dense<0.000000e+00> : vector<16x32xf32>
    %4 = tpu.matmul %2, %3, %cst {dimension_numbers = #tpu.dot_dimension_numbers<[1], [0], [0], [1], [0, 0, 1, 1], [], []>} : vector<16x32xbf16>, vector<32x32xbf16>, vector<16x32xf32> -> vector<16x32xf32>
    %c0_3 = arith.constant 0 : index
    %c0_4 = arith.constant 0 : index
    %5 = vector.load %arg3[%c0_3, %c0_4] : memref<1x32xf32, #tpu.memory_space<vmem>>, vector<1x32xf32>
    %6 = vector.broadcast %5 : vector<1x32xf32> to vector<16x32xf32>
    %7 = arith.addf %4, %6 : vector<16x32xf32>
    %c0_5 = arith.constant 0 : index
    %c0_6 = arith.constant 0 : index
    %8 = vector.load %arg4[%c0_5, %c0_6] : memref<32x64xbf16, #tpu.memory_space<vmem>>, vector<32x64xbf16>
    %cst_7 = arith.constant dense<0.000000e+00> : vector<16x64xf32>
    %9 = tpu.matmul %2, %8, %cst_7 {dimension_numbers = #tpu.dot_dimension_numbers<[1], [0], [0], [1], [0, 0, 1, 1], [], []>} : vector<16x32xbf16>, vector<32x64xbf16>, vector<16x64xf32> -> vector<16x64xf32>
    %c0_8 = arith.constant 0 : index
    %c0_9 = arith.constant 0 : index
    %10 = vector.load %arg5[%c0_8, %c0_9] : memref<1x64xf32, #tpu.memory_space<vmem>>, vector<1x64xf32>
    %11 = vector.broadcast %10 : vector<1x64xf32> to vector<16x64xf32>
    %12 = arith.addf %9, %11 : vector<16x64xf32>
    %13 = arith.truncf %7 : vector<16x32xf32> to vector<16x32xbf16>
    %c0_10 = arith.constant 0 : index
    %c0_11 = arith.constant 0 : index
    %14 = vector.load %arg6[%c0_10, %c0_11] : memref<16x32xbf16, #tpu.memory_space<vmem>>, vector<16x32xbf16>
    tpu.vector_store %arg6[%c0_10, %c0_11], %13 {strides = array<i32>} : memref<16x32xbf16, #tpu.memory_space<vmem>>, vector<16x32xbf16>,
    %15 = arith.truncf %12 : vector<16x64xf32> to vector<16x64xbf16>
    %c0_12 = arith.constant 0 : index
    %c0_13 = arith.constant 0 : index
    %16 = vector.load %arg7[%c0_12, %c0_13] : memref<16x64xbf16, #tpu.memory_space<vmem>>, vector<16x64xbf16>
    tpu.vector_store %arg7[%c0_12, %c0_13], %15 {strides = array<i32>} : memref<16x64xbf16, #tpu.memory_space<vmem>>, vector<16x64xbf16>,
    return
  }
  func.func @transform_0(%arg0: i32) -> (i32, i32) {
    %c0_i32 = arith.constant 0 : i32
    %c0_i32_0 = arith.constant 0 : i32
    return %arg0, %c0_i32 : i32, i32
  }
  func.func @transform_1(%arg0: i32) -> (i32, i32) {
    %c0_i32 = arith.constant 0 : i32
    %c0_i32_0 = arith.constant 0 : i32
    %c0_i32_1 = arith.constant 0 : i32
    return %c0_i32, %c0_i32_0 : i32, i32
  }
  func.func @transform_2(%arg0: i32) -> (i32, i32) {
    %c0_i32 = arith.constant 0 : i32
    %c0_i32_0 = arith.constant 0 : i32
    %c0_i32_1 = arith.constant 0 : i32
    return %c0_i32, %c0_i32_0 : i32, i32
  }
  func.func @transform_3(%arg0: i32) -> (i32, i32) {
    %c0_i32 = arith.constant 0 : i32
    %c0_i32_0 = arith.constant 0 : i32
    %c0_i32_1 = arith.constant 0 : i32
    return %c0_i32, %c0_i32_0 : i32, i32
  }
  func.func @transform_4(%arg0: i32) -> (i32, i32) {
    %c0_i32 = arith.constant 0 : i32
    %c0_i32_0 = arith.constant 0 : i32
    %c0_i32_1 = arith.constant 0 : i32
    return %c0_i32, %c0_i32_0 : i32, i32
  }
  func.func @transform_5(%arg0: i32) -> (i32, i32) {
    %c0_i32 = arith.constant 0 : i32
    %c0_i32_0 = arith.constant 0 : i32
    return %arg0, %c0_i32 : i32, i32
  }
  func.func @transform_6(%arg0: i32) -> (i32, i32) {
    %c0_i32 = arith.constant 0 : i32
    %c0_i32_0 = arith.constant 0 : i32
    return %arg0, %c0_i32 : i32, i32
  }
}

module attributes {stable_mosaic.version = 11 : i64} {
  func.func @kernel(%arg0: i32, %arg1: i32, %arg2: memref<1x8x4xf32, #tpu.memory_space<vmem>>, %arg3: memref<8x32xf32, #tpu.memory_space<vmem>>, %arg4: memref<4x32xbf16, #tpu.memory_space<vmem>>, %arg5: memref<1x32xf32, #tpu.memory_space<vmem>>, %arg6: memref<1x8x32xbf16, #tpu.memory_space<vmem>>) attributes {dimension_semantics = [#tpu.dimension_semantics<parallel>, #tpu.dimension_semantics<parallel>], iteration_bounds = array<i64: 2, 1>, scalar_prefetch = 0 : i64, scratch_operands = 0 : i64, tpu.core_type = #tpu.core_type<tc>, window_params = [{transform_indices = @transform_0, window_bounds = array<i64: 1, 8, 4>}, {transform_indices = @transform_1, window_bounds = array<i64: 8, 32>}, {pipeline_mode = #tpu.pipeline_mode<synchronous>, transform_indices = @transform_2, window_bounds = array<i64: 4, 32>}, {pipeline_mode = #tpu.pipeline_mode<synchronous>, transform_indices = @transform_3, window_bounds = array<i64: 1, 32>}, {transform_indices = @transform_4, window_bounds = array<i64: 1, 8, 32>}]} {
    %c0 = arith.constant 0 : index
    %c0_0 = arith.constant 0 : index
    %c0_1 = arith.constant 0 : index
    %0 = vector.load %arg2[%c0, %c0_0, %c0_1] : memref<1x8x4xf32, #tpu.memory_space<vmem>>, vector<1x8x4xf32>
    %1 = vector.shape_cast %0 : vector<1x8x4xf32> to vector<8x4xf32>
    %2 = arith.truncf %1 : vector<8x4xf32> to vector<8x4xbf16>
    %c0_2 = arith.constant 0 : index
    %c0_3 = arith.constant 0 : index
    %3 = vector.load %arg4[%c0_2, %c0_3] : memref<4x32xbf16, #tpu.memory_space<vmem>>, vector<4x32xbf16>
    %cst = arith.constant dense<0.000000e+00> : vector<8x32xf32>
    %4 = tpu.matmul %2, %3, %cst {dimension_numbers = #tpu.dot_dimension_numbers<[1], [0], [0], [1], [0, 0, 1, 1], [], []>} : vector<8x4xbf16>, vector<4x32xbf16>, vector<8x32xf32> -> vector<8x32xf32>
    %c0_4 = arith.constant 0 : index
    %c0_5 = arith.constant 0 : index
    %5 = vector.load %arg5[%c0_4, %c0_5] : memref<1x32xf32, #tpu.memory_space<vmem>>, vector<1x32xf32>
    %6 = vector.broadcast %5 : vector<1x32xf32> to vector<8x32xf32>
    %7 = arith.addf %4, %6 : vector<8x32xf32>
    %cst_6 = arith.constant 5.65685415 : f32
    %8 = vector.broadcast %cst_6 : f32 to vector<8x32xf32>
    %9 = arith.mulf %7, %8 : vector<8x32xf32>
    %c0_7 = arith.constant 0 : index
    %c0_8 = arith.constant 0 : index
    %10 = vector.load %arg3[%c0_7, %c0_8] : memref<8x32xf32, #tpu.memory_space<vmem>>, vector<8x32xf32>
    %11 = arith.addf %9, %10 : vector<8x32xf32>
    %12 = arith.truncf %11 : vector<8x32xf32> to vector<8x32xbf16>
    %c0_9 = arith.constant 0 : index
    %c0_10 = arith.constant 0 : index
    %c0_11 = arith.constant 0 : index
    %13 = vector.load %arg6[%c0_9, %c0_10, %c0_11] : memref<1x8x32xbf16, #tpu.memory_space<vmem>>, vector<1x8x32xbf16>
    %14 = vector.shape_cast %13 : vector<1x8x32xbf16> to vector<8x32xbf16>
    %15 = vector.shape_cast %12 : vector<8x32xbf16> to vector<1x8x32xbf16>
    tpu.vector_store %arg6[%c0_9, %c0_10, %c0_11], %15 {strides = array<i32>} : memref<1x8x32xbf16, #tpu.memory_space<vmem>>, vector<1x8x32xbf16>,
    return
  }
  func.func @transform_0(%arg0: i32, %arg1: i32) -> (i32, i32, i32) {
    %c0_i32 = arith.constant 0 : i32
    %c0_i32_0 = arith.constant 0 : i32
    return %arg0, %arg1, %c0_i32 : i32, i32, i32
  }
  func.func @transform_1(%arg0: i32, %arg1: i32) -> (i32, i32) {
    %c0_i32 = arith.constant 0 : i32
    %c0_i32_0 = arith.constant 0 : i32
    return %arg1, %c0_i32 : i32, i32
  }
  func.func @transform_2(%arg0: i32, %arg1: i32) -> (i32, i32) {
    %c0_i32 = arith.constant 0 : i32
    %c0_i32_0 = arith.constant 0 : i32
    %c0_i32_1 = arith.constant 0 : i32
    return %c0_i32, %c0_i32_0 : i32, i32
  }
  func.func @transform_3(%arg0: i32, %arg1: i32) -> (i32, i32) {
    %c0_i32 = arith.constant 0 : i32
    %c0_i32_0 = arith.constant 0 : i32
    %c0_i32_1 = arith.constant 0 : i32
    return %c0_i32, %c0_i32_0 : i32, i32
  }
  func.func @transform_4(%arg0: i32, %arg1: i32) -> (i32, i32, i32) {
    %c0_i32 = arith.constant 0 : i32
    %c0_i32_0 = arith.constant 0 : i32
    return %arg0, %arg1, %c0_i32 : i32, i32, i32
  }
}

module attributes {stable_mosaic.version = 11 : i64} {
  func.func @kernel(%arg0: i32, %arg1: i32, %arg2: memref<1x8x32xbf16, #tpu.memory_space<vmem>>, %arg3: memref<1x8x64xbf16, #tpu.memory_space<vmem>>, %arg4: memref<1x1x8xf32, #tpu.memory_space<vmem>>, %arg5: memref<1x8x32xbf16, #tpu.memory_space<vmem>>, %arg6: memref<8x32xf32, #tpu.memory_space<vmem>>) attributes {dimension_semantics = [#tpu.dimension_semantics<parallel>, #tpu.dimension_semantics<parallel>], iteration_bounds = array<i64: 2, 1>, scalar_prefetch = 0 : i64, scratch_operands = 1 : i64, tpu.core_type = #tpu.core_type<tc>, window_params = [{transform_indices = @transform_0, window_bounds = array<i64: 1, 8, 32>}, {transform_indices = @transform_1, window_bounds = array<i64: 1, 8, 64>}, {transform_indices = @transform_2, window_bounds = array<i64: 1, 1, 8>}, {transform_indices = @transform_3, window_bounds = array<i64: 1, 8, 32>}]} {
    %c0 = arith.constant 0 : index
    %c0_0 = arith.constant 0 : index
    %c0_1 = arith.constant 0 : index
    %0 = vector.load %arg2[%c0, %c0_0, %c0_1] : memref<1x8x32xbf16, #tpu.memory_space<vmem>>, vector<1x8x32xbf16>
    %1 = vector.shape_cast %0 : vector<1x8x32xbf16> to vector<8x32xbf16>
    %c0_2 = arith.constant 0 : index
    %c0_3 = arith.constant 0 : index
    %c0_4 = arith.constant 0 : index
    %2 = vector.load %arg3[%c0_2, %c0_3, %c0_4] : memref<1x8x64xbf16, #tpu.memory_space<vmem>>, vector<1x8x64xbf16>
    %3 = vector.shape_cast %2 : vector<1x8x64xbf16> to vector<8x64xbf16>
    %c0_5 = arith.constant 0 : index
    %c0_6 = arith.constant 0 : index
    %c0_7 = arith.constant 0 : index
    %4 = vector.load %arg4[%c0_5, %c0_6, %c0_7] : memref<1x1x8xf32, #tpu.memory_space<vmem>>, vector<1x1x8xf32>
    %5 = vector.shape_cast %4 : vector<1x1x8xf32> to vector<1x8xf32>
    %6 = vector.extract_strided_slice %1 {offsets = [0, 0], sizes = [8, 8], strides = [1, 1]} : vector<8x32xbf16> to vector<8x8xbf16>
    %7 = vector.extract_strided_slice %3 {offsets = [0, 0], sizes = [8, 8], strides = [1, 1]} : vector<8x64xbf16> to vector<8x8xbf16>
    %8 = vector.extract_strided_slice %3 {offsets = [0, 32], sizes = [8, 8], strides = [1, 1]} : vector<8x64xbf16> to vector<8x8xbf16>
    %cst = arith.constant dense<0.000000e+00> : vector<8x8xf32>
    %9 = tpu.matmul %6, %7, %cst {dimension_numbers = #tpu.dot_dimension_numbers<[1], [1], [0], [0], [0, 0, 1, 0], [], []>} : vector<8x8xbf16>, vector<8x8xbf16>, vector<8x8xf32> -> vector<8x8xf32>
    %10 = vector.broadcast %5 : vector<1x8xf32> to vector<8x8xf32>
    %11 = arith.addf %9, %10 : vector<8x8xf32>
    %cst_8 = arith.constant dense<0xFF800000> : vector<8xf32>
    %12 = vector.multi_reduction <maximumf>, %11, %cst_8 [1] : vector<8x8xf32> to vector<8xf32>
    %13 = vector.shape_cast %12 : vector<8xf32> to vector<8x1xf32>
    %14 = vector.broadcast %13 : vector<8x1xf32> to vector<8x8xf32>
    %15 = arith.subf %11, %14 : vector<8x8xf32>
    %16 = math.exp %15 : vector<8x8xf32>
    %cst_9 = arith.constant dense<0.000000e+00> : vector<8xf32>
    %17 = vector.multi_reduction <add>, %16, %cst_9 [1] : vector<8x8xf32> to vector<8xf32>
    %18 = vector.shape_cast %17 : vector<8xf32> to vector<8x1xf32>
    %19 = arith.truncf %16 : vector<8x8xf32> to vector<8x8xbf16>
    %cst_10 = arith.constant dense<0.000000e+00> : vector<8x8xf32>
    %20 = tpu.matmul %19, %8, %cst_10 {dimension_numbers = #tpu.dot_dimension_numbers<[1], [0], [0], [1], [0, 0, 1, 1], [], []>} : vector<8x8xbf16>, vector<8x8xbf16>, vector<8x8xf32> -> vector<8x8xf32>
    %21 = tpu.reciprocal %18 {approx = true} : vector<8x1xf32> -> vector<8x1xf32>
    %22 = vector.broadcast %21 : vector<8x1xf32> to vector<8x8xf32>
    %23 = arith.mulf %20, %22 : vector<8x8xf32>
    %c0_11 = arith.constant 0 : index
    %c0_12 = arith.constant 0 : index
    %24 = vector.load %arg6[%c0_11, %c0_12] : memref<8x32xf32, #tpu.memory_space<vmem>>, vector<8x8xf32>
    tpu.vector_store %arg6[%c0_11, %c0_12], %23 {strides = array<i32>} : memref<8x32xf32, #tpu.memory_space<vmem>>, vector<8x8xf32>,
    %25 = vector.extract_strided_slice %1 {offsets = [0, 8], sizes = [8, 8], strides = [1, 1]} : vector<8x32xbf16> to vector<8x8xbf16>
    %26 = vector.extract_strided_slice %3 {offsets = [0, 8], sizes = [8, 8], strides = [1, 1]} : vector<8x64xbf16> to vector<8x8xbf16>
    %27 = vector.extract_strided_slice %3 {offsets = [0, 40], sizes = [8, 8], strides = [1, 1]} : vector<8x64xbf16> to vector<8x8xbf16>
    %cst_13 = arith.constant dense<0.000000e+00> : vector<8x8xf32>
    %28 = tpu.matmul %25, %26, %cst_13 {dimension_numbers = #tpu.dot_dimension_numbers<[1], [1], [0], [0], [0, 0, 1, 0], [], []>} : vector<8x8xbf16>, vector<8x8xbf16>, vector<8x8xf32> -> vector<8x8xf32>
    %29 = vector.broadcast %5 : vector<1x8xf32> to vector<8x8xf32>
    %30 = arith.addf %28, %29 : vector<8x8xf32>
    %cst_14 = arith.constant dense<0xFF800000> : vector<8xf32>
    %31 = vector.multi_reduction <maximumf>, %30, %cst_14 [1] : vector<8x8xf32> to vector<8xf32>
    %32 = vector.shape_cast %31 : vector<8xf32> to vector<8x1xf32>
    %33 = vector.broadcast %32 : vector<8x1xf32> to vector<8x8xf32>
    %34 = arith.subf %30, %33 : vector<8x8xf32>
    %35 = math.exp %34 : vector<8x8xf32>
    %cst_15 = arith.constant dense<0.000000e+00> : vector<8xf32>
    %36 = vector.multi_reduction <add>, %35, %cst_15 [1] : vector<8x8xf32> to vector<8xf32>
    %37 = vector.shape_cast %36 : vector<8xf32> to vector<8x1xf32>
    %38 = arith.truncf %35 : vector<8x8xf32> to vector<8x8xbf16>
    %cst_16 = arith.constant dense<0.000000e+00> : vector<8x8xf32>
    %39 = tpu.matmul %38, %27, %cst_16 {dimension_numbers = #tpu.dot_dimension_numbers<[1], [0], [0], [1], [0, 0, 1, 1], [], []>} : vector<8x8xbf16>, vector<8x8xbf16>, vector<8x8xf32> -> vector<8x8xf32>
    %40 = tpu.reciprocal %37 {approx = true} : vector<8x1xf32> -> vector<8x1xf32>
    %41 = vector.broadcast %40 : vector<8x1xf32> to vector<8x8xf32>
    %42 = arith.mulf %39, %41 : vector<8x8xf32>
    %c0_17 = arith.constant 0 : index
    %c8 = arith.constant 8 : index
    %43 = vector.load %arg6[%c0_17, %c8] : memref<8x32xf32, #tpu.memory_space<vmem>>, vector<8x8xf32>
    tpu.vector_store %arg6[%c0_17, %c8], %42 {strides = array<i32>} : memref<8x32xf32, #tpu.memory_space<vmem>>, vector<8x8xf32>,
    %44 = vector.extract_strided_slice %1 {offsets = [0, 16], sizes = [8, 8], strides = [1, 1]} : vector<8x32xbf16> to vector<8x8xbf16>
    %45 = vector.extract_strided_slice %3 {offsets = [0, 16], sizes = [8, 8], strides = [1, 1]} : vector<8x64xbf16> to vector<8x8xbf16>
    %46 = vector.extract_strided_slice %3 {offsets = [0, 48], sizes = [8, 8], strides = [1, 1]} : vector<8x64xbf16> to vector<8x8xbf16>
    %cst_18 = arith.constant dense<0.000000e+00> : vector<8x8xf32>
    %47 = tpu.matmul %44, %45, %cst_18 {dimension_numbers = #tpu.dot_dimension_numbers<[1], [1], [0], [0], [0, 0, 1, 0], [], []>} : vector<8x8xbf16>, vector<8x8xbf16>, vector<8x8xf32> -> vector<8x8xf32>
    %48 = vector.broadcast %5 : vector<1x8xf32> to vector<8x8xf32>
    %49 = arith.addf %47, %48 : vector<8x8xf32>
    %cst_19 = arith.constant dense<0xFF800000> : vector<8xf32>
    %50 = vector.multi_reduction <maximumf>, %49, %cst_19 [1] : vector<8x8xf32> to vector<8xf32>
    %51 = vector.shape_cast %50 : vector<8xf32> to vector<8x1xf32>
    %52 = vector.broadcast %51 : vector<8x1xf32> to vector<8x8xf32>
    %53 = arith.subf %49, %52 : vector<8x8xf32>
    %54 = math.exp %53 : vector<8x8xf32>
    %cst_20 = arith.constant dense<0.000000e+00> : vector<8xf32>
    %55 = vector.multi_reduction <add>, %54, %cst_20 [1] : vector<8x8xf32> to vector<8xf32>
    %56 = vector.shape_cast %55 : vector<8xf32> to vector<8x1xf32>
    %57 = arith.truncf %54 : vector<8x8xf32> to vector<8x8xbf16>
    %cst_21 = arith.constant dense<0.000000e+00> : vector<8x8xf32>
    %58 = tpu.matmul %57, %46, %cst_21 {dimension_numbers = #tpu.dot_dimension_numbers<[1], [0], [0], [1], [0, 0, 1, 1], [], []>} : vector<8x8xbf16>, vector<8x8xbf16>, vector<8x8xf32> -> vector<8x8xf32>
    %59 = tpu.reciprocal %56 {approx = true} : vector<8x1xf32> -> vector<8x1xf32>
    %60 = vector.broadcast %59 : vector<8x1xf32> to vector<8x8xf32>
    %61 = arith.mulf %58, %60 : vector<8x8xf32>
    %c0_22 = arith.constant 0 : index
    %c16 = arith.constant 16 : index
    %62 = vector.load %arg6[%c0_22, %c16] : memref<8x32xf32, #tpu.memory_space<vmem>>, vector<8x8xf32>
    tpu.vector_store %arg6[%c0_22, %c16], %61 {strides = array<i32>} : memref<8x32xf32, #tpu.memory_space<vmem>>, vector<8x8xf32>,
    %63 = vector.extract_strided_slice %1 {offsets = [0, 24], sizes = [8, 8], strides = [1, 1]} : vector<8x32xbf16> to vector<8x8xbf16>
    %64 = vector.extract_strided_slice %3 {offsets = [0, 24], sizes = [8, 8], strides = [1, 1]} : vector<8x64xbf16> to vector<8x8xbf16>
    %65 = vector.extract_strided_slice %3 {offsets = [0, 56], sizes = [8, 8], strides = [1, 1]} : vector<8x64xbf16> to vector<8x8xbf16>
    %cst_23 = arith.constant dense<0.000000e+00> : vector<8x8xf32>
    %66 = tpu.matmul %63, %64, %cst_23 {dimension_numbers = #tpu.dot_dimension_numbers<[1], [1], [0], [0], [0, 0, 1, 0], [], []>} : vector<8x8xbf16>, vector<8x8xbf16>, vector<8x8xf32> -> vector<8x8xf32>
    %67 = vector.broadcast %5 : vector<1x8xf32> to vector<8x8xf32>
    %68 = arith.addf %66, %67 : vector<8x8xf32>
    %cst_24 = arith.constant dense<0xFF800000> : vector<8xf32>
    %69 = vector.multi_reduction <maximumf>, %68, %cst_24 [1] : vector<8x8xf32> to vector<8xf32>
    %70 = vector.shape_cast %69 : vector<8xf32> to vector<8x1xf32>
    %71 = vector.broadcast %70 : vector<8x1xf32> to vector<8x8xf32>
    %72 = arith.subf %68, %71 : vector<8x8xf32>
    %73 = math.exp %72 : vector<8x8xf32>
    %cst_25 = arith.constant dense<0.000000e+00> : vector<8xf32>
    %74 = vector.multi_reduction <add>, %73, %cst_25 [1] : vector<8x8xf32> to vector<8xf32>
    %75 = vector.shape_cast %74 : vector<8xf32> to vector<8x1xf32>
    %76 = arith.truncf %73 : vector<8x8xf32> to vector<8x8xbf16>
    %cst_26 = arith.constant dense<0.000000e+00> : vector<8x8xf32>
    %77 = tpu.matmul %76, %65, %cst_26 {dimension_numbers = #tpu.dot_dimension_numbers<[1], [0], [0], [1], [0, 0, 1, 1], [], []>} : vector<8x8xbf16>, vector<8x8xbf16>, vector<8x8xf32> -> vector<8x8xf32>
    %78 = tpu.reciprocal %75 {approx = true} : vector<8x1xf32> -> vector<8x1xf32>
    %79 = vector.broadcast %78 : vector<8x1xf32> to vector<8x8xf32>
    %80 = arith.mulf %77, %79 : vector<8x8xf32>
    %c0_27 = arith.constant 0 : index
    %c24 = arith.constant 24 : index
    %81 = vector.load %arg6[%c0_27, %c24] : memref<8x32xf32, #tpu.memory_space<vmem>>, vector<8x8xf32>
    tpu.vector_store %arg6[%c0_27, %c24], %80 {strides = array<i32>} : memref<8x32xf32, #tpu.memory_space<vmem>>, vector<8x8xf32>,
    %c0_28 = arith.constant 0 : index
    %c0_29 = arith.constant 0 : index
    %82 = vector.load %arg6[%c0_28, %c0_29] : memref<8x32xf32, #tpu.memory_space<vmem>>, vector<8x32xf32>
    %83 = arith.truncf %82 : vector<8x32xf32> to vector<8x32xbf16>
    %c0_30 = arith.constant 0 : index
    %c0_31 = arith.constant 0 : index
    %c0_32 = arith.constant 0 : index
    %84 = vector.load %arg5[%c0_30, %c0_31, %c0_32] : memref<1x8x32xbf16, #tpu.memory_space<vmem>>, vector<1x8x32xbf16>
    %85 = vector.shape_cast %84 : vector<1x8x32xbf16> to vector<8x32xbf16>
    %86 = vector.shape_cast %83 : vector<8x32xbf16> to vector<1x8x32xbf16>
    tpu.vector_store %arg5[%c0_30, %c0_31, %c0_32], %86 {strides = array<i32>} : memref<1x8x32xbf16, #tpu.memory_space<vmem>>, vector<1x8x32xbf16>,
    return
  }
  func.func @transform_0(%arg0: i32, %arg1: i32) -> (i32, i32, i32) {
    %c0_i32 = arith.constant 0 : i32
    %c0_i32_0 = arith.constant 0 : i32
    return %arg0, %arg1, %c0_i32 : i32, i32, i32
  }
  func.func @transform_1(%arg0: i32, %arg1: i32) -> (i32, i32, i32) {
    %c0_i32 = arith.constant 0 : i32
    %c0_i32_0 = arith.constant 0 : i32
    %c0_i32_1 = arith.constant 0 : i32
    return %arg0, %c0_i32, %c0_i32_0 : i32, i32, i32
  }
  func.func @transform_2(%arg0: i32, %arg1: i32) -> (i32, i32, i32) {
    %c0_i32 = arith.constant 0 : i32
    %c0_i32_0 = arith.constant 0 : i32
    %c0_i32_1 = arith.constant 0 : i32
    return %arg0, %c0_i32, %c0_i32_0 : i32, i32, i32
  }
  func.func @transform_3(%arg0: i32, %arg1: i32) -> (i32, i32, i32) {
    %c0_i32 = arith.constant 0 : i32
    %c0_i32_0 = arith.constant 0 : i32
    return %arg0, %arg1, %c0_i32 : i32, i32, i32
  }
}

module attributes {stable_mosaic.version = 11 : i64} {
  func.func @kernel(%arg0: i32, %arg1: memref<16x32xbf16, #tpu.memory_space<vmem>>, %arg2: memref<32x32xbf16, #tpu.memory_space<vmem>>, %arg3: memref<1x32xf32, #tpu.memory_space<vmem>>, %arg4: memref<16x32xbf16, #tpu.memory_space<vmem>>, %arg5: memref<16x32xbf16, #tpu.memory_space<vmem>>) attributes {dimension_semantics = [#tpu.dimension_semantics<parallel>], iteration_bounds = array<i64: 1>, scalar_prefetch = 0 : i64, scratch_operands = 0 : i64, tpu.core_type = #tpu.core_type<tc>, window_params = [{transform_indices = @transform_0, window_bounds = array<i64: 16, 32>}, {pipeline_mode = #tpu.pipeline_mode<synchronous>, transform_indices = @transform_1, window_bounds = array<i64: 32, 32>}, {pipeline_mode = #tpu.pipeline_mode<synchronous>, transform_indices = @transform_2, window_bounds = array<i64: 1, 32>}, {transform_indices = @transform_3, window_bounds = array<i64: 16, 32>}, {transform_indices = @transform_4, window_bounds = array<i64: 16, 32>}]} {
    %c0 = arith.constant 0 : index
    %c0_0 = arith.constant 0 : index
    %0 = vector.load %arg1[%c0, %c0_0] : memref<16x32xbf16, #tpu.memory_space<vmem>>, vector<16x32xbf16>
    %c0_1 = arith.constant 0 : index
    %c0_2 = arith.constant 0 : index
    %1 = vector.load %arg2[%c0_1, %c0_2] : memref<32x32xbf16, #tpu.memory_space<vmem>>, vector<32x32xbf16>
    %cst = arith.constant dense<0.000000e+00> : vector<16x32xf32>
    %2 = tpu.matmul %0, %1, %cst {dimension_numbers = #tpu.dot_dimension_numbers<[1], [0], [0], [1], [0, 0, 1, 1], [], []>} : vector<16x32xbf16>, vector<32x32xbf16>, vector<16x32xf32> -> vector<16x32xf32>
    %c0_3 = arith.constant 0 : index
    %c0_4 = arith.constant 0 : index
    %3 = vector.load %arg3[%c0_3, %c0_4] : memref<1x32xf32, #tpu.memory_space<vmem>>, vector<1x32xf32>
    %4 = vector.broadcast %3 : vector<1x32xf32> to vector<16x32xf32>
    %5 = arith.addf %2, %4 : vector<16x32xf32>
    %c0_5 = arith.constant 0 : index
    %c0_6 = arith.constant 0 : index
    %6 = vector.load %arg4[%c0_5, %c0_6] : memref<16x32xbf16, #tpu.memory_space<vmem>>, vector<16x32xbf16>
    %7 = arith.extf %6 : vector<16x32xbf16> to vector<16x32xf32>
    %8 = arith.addf %5, %7 : vector<16x32xf32>
    %9 = arith.truncf %8 : vector<16x32xf32> to vector<16x32xbf16>
    %c0_7 = arith.constant 0 : index
    %c0_8 = arith.constant 0 : index
    %10 = vector.load %arg5[%c0_7, %c0_8] : memref<16x32xbf16, #tpu.memory_space<vmem>>, vector<16x32xbf16>
    tpu.vector_store %arg5[%c0_7, %c0_8], %9 {strides = array<i32>} : memref<16x32xbf16, #tpu.memory_space<vmem>>, vector<16x32xbf16>,
    return
  }
  func.func @transform_0(%arg0: i32) -> (i32, i32) {
    %c0_i32 = arith.constant 0 : i32
    %c0_i32_0 = arith.constant 0 : i32
    return %arg0, %c0_i32 : i32, i32
  }
  func.func @transform_1(%arg0: i32) -> (i32, i32) {
    %c0_i32 = arith.constant 0 : i32
    %c0_i32_0 = arith.constant 0 : i32
    %c0_i32_1 = arith.constant 0 : i32
    return %c0_i32, %c0_i32_0 : i32, i32
  }
  func.func @transform_2(%arg0: i32) -> (i32, i32) {
    %c0_i32 = arith.constant 0 : i32
    %c0_i32_0 = arith.constant 0 : i32
    %c0_i32_1 = arith.constant 0 : i32
    return %c0_i32, %c0_i32_0 : i32, i32
  }
  func.func @transform_3(%arg0: i32) -> (i32, i32) {
    %c0_i32 = arith.constant 0 : i32
    %c0_i32_0 = arith.constant 0 : i32
    return %arg0, %c0_i32 : i32, i32
  }
  func.func @transform_4(%arg0: i32) -> (i32, i32) {
    %c0_i32 = arith.constant 0 : i32
    %c0_i32_0 = arith.constant 0 : i32
    return %arg0, %c0_i32 : i32, i32
  }
}

module attributes {stable_mosaic.version = 11 : i64} {
  func.func @kernel(%arg0: i32, %arg1: i32, %arg2: memref<16x32xbf16, #tpu.memory_space<vmem>>, %arg3: memref<1x32xf32, #tpu.memory_space<vmem>>, %arg4: memref<1x32xf32, #tpu.memory_space<vmem>>, %arg5: memref<1x32xf32, #tpu.memory_space<vmem>>, %arg6: memref<1x32xf32, #tpu.memory_space<vmem>>, %arg7: memref<1x32xf32, #tpu.memory_space<vmem>>, %arg8: memref<1x32xf32, #tpu.memory_space<vmem>>) attributes {dimension_semantics = [#tpu.dimension_semantics<parallel>, #tpu.dimension_semantics<arbitrary>], iteration_bounds = array<i64: 1, 1>, scalar_prefetch = 0 : i64, scratch_operands = 2 : i64, tpu.core_type = #tpu.core_type<tc>, window_params = [{transform_indices = @transform_0, window_bounds = array<i64: 16, 32>}, {transform_indices = @transform_1, window_bounds = array<i64: 1, 32>}, {transform_indices = @transform_2, window_bounds = array<i64: 1, 32>}, {transform_indices = @transform_3, window_bounds = array<i64: 1, 32>}, {transform_indices = @transform_4, window_bounds = array<i64: 1, 32>}]} {
    %c0_i32 = arith.constant 0 : i32
    %0 = arith.cmpi eq, %arg1, %c0_i32 : i32
    %1 = arith.extui %0 : i1 to i32
    %c0_i32_0 = arith.constant 0 : i32
    %2 = arith.cmpi ne, %1, %c0_i32_0 : i32
    scf.if %2 {
      %cst_13 = arith.constant 0.000000e+00 : f32
      %19 = vector.broadcast %cst_13 : f32 to vector<1x32xf32>
      %c0_14 = arith.constant 0 : index
      %c0_15 = arith.constant 0 : index
      %20 = vector.load %arg7[%c0_14, %c0_15] : memref<1x32xf32, #tpu.memory_space<vmem>>, vector<1x32xf32>
      tpu.vector_store %arg7[%c0_14, %c0_15], %19 {strides = array<i32>} : memref<1x32xf32, #tpu.memory_space<vmem>>, vector<1x32xf32>,
      %cst_16 = arith.constant 0.000000e+00 : f32
      %21 = vector.broadcast %cst_16 : f32 to vector<1x32xf32>
      %c0_17 = arith.constant 0 : index
      %c0_18 = arith.constant 0 : index
      %22 = vector.load %arg8[%c0_17, %c0_18] : memref<1x32xf32, #tpu.memory_space<vmem>>, vector<1x32xf32>
      tpu.vector_store %arg8[%c0_17, %c0_18], %21 {strides = array<i32>} : memref<1x32xf32, #tpu.memory_space<vmem>>, vector<1x32xf32>,
    } else {
    }
    %c0 = arith.constant 0 : index
    %c0_1 = arith.constant 0 : index
    %3 = vector.load %arg2[%c0, %c0_1] : memref<16x32xbf16, #tpu.memory_space<vmem>>, vector<16x32xbf16>
    %4 = arith.extf %3 : vector<16x32xbf16> to vector<16x32xf32>
    %c0_2 = arith.constant 0 : index
    %c0_3 = arith.constant 0 : index
    %5 = vector.load %arg7[%c0_2, %c0_3] : memref<1x32xf32, #tpu.memory_space<vmem>>, vector<1x32xf32>
    %cst = arith.constant dense<0.000000e+00> : vector<32xf32>
    %6 = vector.multi_reduction <add>, %4, %cst [0] : vector<16x32xf32> to vector<32xf32>
    %7 = vector.shape_cast %6 : vector<32xf32> to vector<1x32xf32>
    %8 = arith.addf %5, %7 : vector<1x32xf32>
    %c0_4 = arith.constant 0 : index
    %c0_5 = arith.constant 0 : index
    %9 = vector.load %arg7[%c0_4, %c0_5] : memref<1x32xf32, #tpu.memory_space<vmem>>, vector<1x32xf32>
    tpu.vector_store %arg7[%c0_4, %c0_5], %8 {strides = array<i32>} : memref<1x32xf32, #tpu.memory_space<vmem>>, vector<1x32xf32>,
    %c0_6 = arith.constant 0 : index
    %c0_7 = arith.constant 0 : index
    %10 = vector.load %arg8[%c0_6, %c0_7] : memref<1x32xf32, #tpu.memory_space<vmem>>, vector<1x32xf32>
    %11 = arith.mulf %4, %4 : vector<16x32xf32>
    %cst_8 = arith.constant dense<0.000000e+00> : vector<32xf32>
    %12 = vector.multi_reduction <add>, %11, %cst_8 [0] : vector<16x32xf32> to vector<32xf32>
    %13 = vector.shape_cast %12 : vector<32xf32> to vector<1x32xf32>
    %14 = arith.addf %10, %13 : vector<1x32xf32>
    %c0_9 = arith.constant 0 : index
    %c0_10 = arith.constant 0 : index
    %15 = vector.load %arg8[%c0_9, %c0_10] : memref<1x32xf32, #tpu.memory_space<vmem>>, vector<1x32xf32>
    tpu.vector_store %arg8[%c0_9, %c0_10], %14 {strides = array<i32>} : memref<1x32xf32, #tpu.memory_space<vmem>>, vector<1x32xf32>,
    %c0_i32_11 = arith.constant 0 : i32
    %16 = arith.cmpi eq, %arg1, %c0_i32_11 : i32
    %17 = arith.extui %16 : i1 to i32
    %c0_i32_12 = arith.constant 0 : i32
    %18 = arith.cmpi ne, %17, %c0_i32_12 : i32
    scf.if %18 {
      %c0_13 = arith.constant 0 : index
      %c0_14 = arith.constant 0 : index
      %19 = vector.load %arg7[%c0_13, %c0_14] : memref<1x32xf32, #tpu.memory_space<vmem>>, vector<1x32xf32>
      %cst_15 = arith.constant 6.250000e-02 : f32
      %20 = vector.broadcast %cst_15 : f32 to vector<1x32xf32>
      %21 = arith.mulf %19, %20 : vector<1x32xf32>
      %c0_16 = arith.constant 0 : index
      %c0_17 = arith.constant 0 : index
      %22 = vector.load %arg8[%c0_16, %c0_17] : memref<1x32xf32, #tpu.memory_space<vmem>>, vector<1x32xf32>
      %cst_18 = arith.constant 6.250000e-02 : f32
      %23 = vector.broadcast %cst_18 : f32 to vector<1x32xf32>
      %24 = arith.mulf %22, %23 : vector<1x32xf32>
      %25 = arith.mulf %21, %21 : vector<1x32xf32>
      %26 = arith.subf %24, %25 : vector<1x32xf32>
      %cst_19 = arith.constant 0.000000e+00 : f32
      %27 = vector.broadcast %cst_19 : f32 to vector<1x32xf32>
      %28 = arith.maximumf %26, %27 : vector<1x32xf32>
      %c0_20 = arith.constant 0 : index
      %c0_21 = arith.constant 0 : index
      %29 = vector.load %arg3[%c0_20, %c0_21] : memref<1x32xf32, #tpu.memory_space<vmem>>, vector<1x32xf32>
      %cst_22 = arith.constant 9.99999974E-6 : f32
      %30 = vector.broadcast %cst_22 : f32 to vector<1x32xf32>
      %31 = arith.addf %28, %30 : vector<1x32xf32>
      %32 = math.rsqrt %31 : vector<1x32xf32>
      %33 = arith.mulf %29, %32 : vector<1x32xf32>
      %c0_23 = arith.constant 0 : index
      %c0_24 = arith.constant 0 : index
      %34 = vector.load %arg5[%c0_23, %c0_24] : memref<1x32xf32, #tpu.memory_space<vmem>>, vector<1x32xf32>
      tpu.vector_store %arg5[%c0_23, %c0_24], %33 {strides = array<i32>} : memref<1x32xf32, #tpu.memory_space<vmem>>, vector<1x32xf32>,
      %c0_25 = arith.constant 0 : index
      %c0_26 = arith.constant 0 : index
      %35 = vector.load %arg4[%c0_25, %c0_26] : memref<1x32xf32, #tpu.memory_space<vmem>>, vector<1x32xf32>
      %36 = arith.mulf %21, %33 : vector<1x32xf32>
      %37 = arith.subf %35, %36 : vector<1x32xf32>
      %c0_27 = arith.constant 0 : index
      %c0_28 = arith.constant 0 : index
      %38 = vector.load %arg6[%c0_27, %c0_28] : memref<1x32xf32, #tpu.memory_space<vmem>>, vector<1x32xf32>
      tpu.vector_store %arg6[%c0_27, %c0_28], %37 {strides = array<i32>} : memref<1x32xf32, #tpu.memory_space<vmem>>, vector<1x32xf32>,
    } else {
    }
    return
  }
  func.func @transform_0(%arg0: i32, %arg1: i32) -> (i32, i32) {
    %c0_i32 = arith.constant 0 : i32
    return %arg1, %arg0 : i32, i32
  }
  func.func @transform_1(%arg0: i32, %arg1: i32) -> (i32, i32) {
    %c0_i32 = arith.constant 0 : i32
    %c0_i32_0 = arith.constant 0 : i32
    return %c0_i32, %arg0 : i32, i32
  }
  func.func @transform_2(%arg0: i32, %arg1: i32) -> (i32, i32) {
    %c0_i32 = arith.constant 0 : i32
    %c0_i32_0 = arith.constant 0 : i32
    return %c0_i32, %arg0 : i32, i32
  }
  func.func @transform_3(%arg0: i32, %arg1: i32) -> (i32, i32) {
    %c0_i32 = arith.constant 0 : i32
    %c0_i32_0 = arith.constant 0 : i32
    return %c0_i32, %arg0 : i32, i32
  }
  func.func @transform_4(%arg0: i32, %arg1: i32) -> (i32, i32) {
    %c0_i32 = arith.constant 0 : i32
    %c0_i32_0 = arith.constant 0 : i32
    return %c0_i32, %arg0 : i32, i32
  }
}

module attributes {stable_mosaic.version = 11 : i64} {
  func.func @kernel(%arg0: i32, %arg1: memref<16x32xbf16, #tpu.memory_space<vmem>>, %arg2: memref<1x32xf32, #tpu.memory_space<vmem>>, %arg3: memref<1x32xf32, #tpu.memory_space<vmem>>, %arg4: memref<32x64xbf16, #tpu.memory_space<vmem>>, %arg5: memref<1x64xf32, #tpu.memory_space<vmem>>, %arg6: memref<64x32xbf16, #tpu.memory_space<vmem>>, %arg7: memref<1x32xf32, #tpu.memory_space<vmem>>, %arg8: memref<16x32xbf16, #tpu.memory_space<vmem>>) attributes {dimension_semantics = [#tpu.dimension_semantics<parallel>], iteration_bounds = array<i64: 1>, scalar_prefetch = 0 : i64, scratch_operands = 0 : i64, tpu.core_type = #tpu.core_type<tc>, window_params = [{transform_indices = @transform_0, window_bounds = array<i64: 16, 32>}, {pipeline_mode = #tpu.pipeline_mode<synchronous>, transform_indices = @transform_1, window_bounds = array<i64: 1, 32>}, {pipeline_mode = #tpu.pipeline_mode<synchronous>, transform_indices = @transform_2, window_bounds = array<i64: 1, 32>}, {pipeline_mode = #tpu.pipeline_mode<synchronous>, transform_indices = @transform_3, window_bounds = array<i64: 32, 64>}, {pipeline_mode = #tpu.pipeline_mode<synchronous>, transform_indices = @transform_4, window_bounds = array<i64: 1, 64>}, {pipeline_mode = #tpu.pipeline_mode<synchronous>, transform_indices = @transform_5, window_bounds = array<i64: 64, 32>}, {pipeline_mode = #tpu.pipeline_mode<synchronous>, transform_indices = @transform_6, window_bounds = array<i64: 1, 32>}, {transform_indices = @transform_7, window_bounds = array<i64: 16, 32>}]} {
    %c0 = arith.constant 0 : index
    %c0_0 = arith.constant 0 : index
    %0 = vector.load %arg1[%c0, %c0_0] : memref<16x32xbf16, #tpu.memory_space<vmem>>, vector<16x32xbf16>
    %1 = arith.extf %0 : vector<16x32xbf16> to vector<16x32xf32>
    %c0_1 = arith.constant 0 : index
    %c0_2 = arith.constant 0 : index
    %2 = vector.load %arg2[%c0_1, %c0_2] : memref<1x32xf32, #tpu.memory_space<vmem>>, vector<1x32xf32>
    %3 = vector.broadcast %2 : vector<1x32xf32> to vector<16x32xf32>
    %4 = arith.mulf %1, %3 : vector<16x32xf32>
    %c0_3 = arith.constant 0 : index
    %c0_4 = arith.constant 0 : index
    %5 = vector.load %arg3[%c0_3, %c0_4] : memref<1x32xf32, #tpu.memory_space<vmem>>, vector<1x32xf32>
    %6 = vector.broadcast %5 : vector<1x32xf32> to vector<16x32xf32>
    %7 = arith.addf %4, %6 : vector<16x32xf32>
    %8 = arith.truncf %7 : vector<16x32xf32> to vector<16x32xbf16>
    %c0_5 = arith.constant 0 : index
    %c0_6 = arith.constant 0 : index
    %9 = vector.load %arg4[%c0_5, %c0_6] : memref<32x64xbf16, #tpu.memory_space<vmem>>, vector<32x64xbf16>
    %cst = arith.constant dense<0.000000e+00> : vector<16x64xf32>
    %10 = tpu.matmul %8, %9, %cst {dimension_numbers = #tpu.dot_dimension_numbers<[1], [0], [0], [1], [0, 0, 1, 1], [], []>} : vector<16x32xbf16>, vector<32x64xbf16>, vector<16x64xf32> -> vector<16x64xf32>
    %c0_7 = arith.constant 0 : index
    %c0_8 = arith.constant 0 : index
    %11 = vector.load %arg5[%c0_7, %c0_8] : memref<1x64xf32, #tpu.memory_space<vmem>>, vector<1x64xf32>
    %12 = vector.broadcast %11 : vector<1x64xf32> to vector<16x64xf32>
    %13 = arith.addf %10, %12 : vector<16x64xf32>
    %cst_9 = arith.constant 5.000000e-01 : f32
    %14 = vector.broadcast %cst_9 : f32 to vector<16x64xf32>
    %15 = arith.mulf %14, %13 : vector<16x64xf32>
    %cst_10 = arith.constant 0.707106769 : f32
    %16 = vector.broadcast %cst_10 : f32 to vector<16x64xf32>
    %17 = arith.mulf %13, %16 : vector<16x64xf32>
    %18 = math.absf %17 : vector<16x64xf32>
    %cst_11 = arith.constant 0.327591091 : f32
    %19 = vector.broadcast %cst_11 : f32 to vector<16x64xf32>
    %20 = arith.mulf %19, %18 : vector<16x64xf32>
    %cst_12 = arith.constant 1.000000e+00 : f32
    %21 = vector.broadcast %cst_12 : f32 to vector<16x64xf32>
    %22 = arith.addf %21, %20 : vector<16x64xf32>
    %23 = tpu.reciprocal %22 {approx = true} : vector<16x64xf32> -> vector<16x64xf32>
    %cst_13 = arith.constant 1.06140542 : f32
    %24 = vector.broadcast %cst_13 : f32 to vector<16x64xf32>
    %25 = arith.mulf %24, %23 : vector<16x64xf32>
    %cst_14 = arith.constant -1.45315206 : f32
    %26 = vector.broadcast %cst_14 : f32 to vector<16x64xf32>
    %27 = arith.addf %25, %26 : vector<16x64xf32>
    %28 = arith.mulf %27, %23 : vector<16x64xf32>
    %cst_15 = arith.constant 1.42141378 : f32
    %29 = vector.broadcast %cst_15 : f32 to vector<16x64xf32>
    %30 = arith.addf %28, %29 : vector<16x64xf32>
    %31 = arith.mulf %30, %23 : vector<16x64xf32>
    %cst_16 = arith.constant -0.284496725 : f32
    %32 = vector.broadcast %cst_16 : f32 to vector<16x64xf32>
    %33 = arith.addf %31, %32 : vector<16x64xf32>
    %34 = arith.mulf %33, %23 : vector<16x64xf32>
    %cst_17 = arith.constant 0.254829586 : f32
    %35 = vector.broadcast %cst_17 : f32 to vector<16x64xf32>
    %36 = arith.addf %34, %35 : vector<16x64xf32>
    %37 = arith.mulf %36, %23 : vector<16x64xf32>
    %cst_18 = arith.constant 0.000000e+00 : f32
    %38 = vector.broadcast %cst_18 : f32 to vector<16x64xf32>
    %39 = arith.subf %38, %18 : vector<16x64xf32>
    %40 = arith.mulf %39, %18 : vector<16x64xf32>
    %41 = math.exp %40 : vector<16x64xf32>
    %42 = arith.mulf %37, %41 : vector<16x64xf32>
    %cst_19 = arith.constant 1.000000e+00 : f32
    %43 = vector.broadcast %cst_19 : f32 to vector<16x64xf32>
    %44 = arith.subf %43, %42 : vector<16x64xf32>
    %cst_20 = arith.constant 0.000000e+00 : f32
    %45 = vector.broadcast %cst_20 : f32 to vector<16x64xf32>
    %46 = arith.cmpf olt, %17, %45 : vector<16x64xf32>
    %cst_21 = arith.constant 0.000000e+00 : f32
    %47 = vector.broadcast %cst_21 : f32 to vector<16x64xf32>
    %48 = arith.subf %47, %44 : vector<16x64xf32>
    %49 = arith.select %46, %48, %44 : vector<16x64xi1>, vector<16x64xf32>
    %cst_22 = arith.constant 1.000000e+00 : f32
    %50 = vector.broadcast %cst_22 : f32 to vector<16x64xf32>
    %51 = arith.addf %50, %49 : vector<16x64xf32>
    %52 = arith.mulf %15, %51 : vector<16x64xf32>
    %53 = arith.truncf %52 : vector<16x64xf32> to vector<16x64xbf16>
    %c0_23 = arith.constant 0 : index
    %c0_24 = arith.constant 0 : index
    %54 = vector.load %arg6[%c0_23, %c0_24] : memref<64x32xbf16, #tpu.memory_space<vmem>>, vector<64x32xbf16>
    %cst_25 = arith.constant dense<0.000000e+00> : vector<16x32xf32>
    %55 = tpu.matmul %53, %54, %cst_25 {dimension_numbers = #tpu.dot_dimension_numbers<[1], [0], [0], [1], [0, 0, 1, 1], [], []>} : vector<16x64xbf16>, vector<64x32xbf16>, vector<16x32xf32> -> vector<16x32xf32>
    %c0_26 = arith.constant 0 : index
    %c0_27 = arith.constant 0 : index
    %56 = vector.load %arg7[%c0_26, %c0_27] : memref<1x32xf32, #tpu.memory_space<vmem>>, vector<1x32xf32>
    %57 = vector.broadcast %56 : vector<1x32xf32> to vector<16x32xf32>
    %58 = arith.addf %55, %57 : vector<16x32xf32>
    %59 = arith.addf %58, %7 : vector<16x32xf32>
    %60 = arith.truncf %59 : vector<16x32xf32> to vector<16x32xbf16>
    %c0_28 = arith.constant 0 : index
    %c0_29 = arith.constant 0 : index
    %61 = vector.load %arg8[%c0_28, %c0_29] : memref<16x32xbf16, #tpu.memory_space<vmem>>, vector<16x32xbf16>
    tpu.vector_store %arg8[%c0_28, %c0_29], %60 {strides = array<i32>} : memref<16x32xbf16, #tpu.memory_space<vmem>>, vector<16x32xbf16>,
    return
  }
  func.func @transform_0(%arg0: i32) -> (i32, i32) {
    %c0_i32 = arith.constant 0 : i32
    %c0_i32_0 = arith.constant 0 : i32
    return %arg0, %c0_i32 : i32, i32
  }
  func.func @transform_1(%arg0: i32) -> (i32, i32) {
    %c0_i32 = arith.constant 0 : i32
    %c0_i32_0 = arith.constant 0 : i32
    %c0_i32_1 = arith.constant 0 : i32
    return %c0_i32, %c0_i32_0 : i32, i32
  }
  func.func @transform_2(%arg0: i32) -> (i32, i32) {
    %c0_i32 = arith.constant 0 : i32
    %c0_i32_0 = arith.constant 0 : i32
    %c0_i32_1 = arith.constant 0 : i32
    return %c0_i32, %c0_i32_0 : i32, i32
  }
  func.func @transform_3(%arg0: i32) -> (i32, i32) {
    %c0_i32 = arith.constant 0 : i32
    %c0_i32_0 = arith.constant 0 : i32
    %c0_i32_1 = arith.constant 0 : i32
    return %c0_i32, %c0_i32_0 : i32, i32
  }
  func.func @transform_4(%arg0: i32) -> (i32, i32) {
    %c0_i32 = arith.constant 0 : i32
    %c0_i32_0 = arith.constant 0 : i32
    %c0_i32_1 = arith.constant 0 : i32
    return %c0_i32, %c0_i32_0 : i32, i32
  }
  func.func @transform_5(%arg0: i32) -> (i32, i32) {
    %c0_i32 = arith.constant 0 : i32
    %c0_i32_0 = arith.constant 0 : i32
    %c0_i32_1 = arith.constant 0 : i32
    return %c0_i32, %c0_i32_0 : i32, i32
  }
  func.func @transform_6(%arg0: i32) -> (i32, i32) {
    %c0_i32 = arith.constant 0 : i32
    %c0_i32_0 = arith.constant 0 : i32
    %c0_i32_1 = arith.constant 0 : i32
    return %c0_i32, %c0_i32_0 : i32, i32
  }
  func.func @transform_7(%arg0: i32) -> (i32, i32) {
    %c0_i32 = arith.constant 0 : i32
    %c0_i32_0 = arith.constant 0 : i32
    return %arg0, %c0_i32 : i32, i32
  }
}

module attributes {stable_mosaic.version = 11 : i64} {
  func.func @kernel(%arg0: i32, %arg1: memref<16x32xbf16, #tpu.memory_space<vmem>>, %arg2: memref<1x32xf32, #tpu.memory_space<vmem>>, %arg3: memref<1x32xf32, #tpu.memory_space<vmem>>, %arg4: memref<32x32xbf16, #tpu.memory_space<vmem>>, %arg5: memref<1x32xf32, #tpu.memory_space<vmem>>, %arg6: memref<32x64xbf16, #tpu.memory_space<vmem>>, %arg7: memref<1x64xf32, #tpu.memory_space<vmem>>, %arg8: memref<16x32xbf16, #tpu.memory_space<vmem>>, %arg9: memref<16x64xbf16, #tpu.memory_space<vmem>>) attributes {dimension_semantics = [#tpu.dimension_semantics<parallel>], iteration_bounds = array<i64: 1>, scalar_prefetch = 0 : i64, scratch_operands = 0 : i64, tpu.core_type = #tpu.core_type<tc>, window_params = [{transform_indices = @transform_0, window_bounds = array<i64: 16, 32>}, {pipeline_mode = #tpu.pipeline_mode<synchronous>, transform_indices = @transform_1, window_bounds = array<i64: 1, 32>}, {pipeline_mode = #tpu.pipeline_mode<synchronous>, transform_indices = @transform_2, window_bounds = array<i64: 1, 32>}, {pipeline_mode = #tpu.pipeline_mode<synchronous>, transform_indices = @transform_3, window_bounds = array<i64: 32, 32>}, {pipeline_mode = #tpu.pipeline_mode<synchronous>, transform_indices = @transform_4, window_bounds = array<i64: 1, 32>}, {pipeline_mode = #tpu.pipeline_mode<synchronous>, transform_indices = @transform_5, window_bounds = array<i64: 32, 64>}, {pipeline_mode = #tpu.pipeline_mode<synchronous>, transform_indices = @transform_6, window_bounds = array<i64: 1, 64>}, {transform_indices = @transform_7, window_bounds = array<i64: 16, 32>}, {transform_indices = @transform_8, window_bounds = array<i64: 16, 64>}]} {
    %c0 = arith.constant 0 : index
    %c0_0 = arith.constant 0 : index
    %0 = vector.load %arg1[%c0, %c0_0] : memref<16x32xbf16, #tpu.memory_space<vmem>>, vector<16x32xbf16>
    %1 = arith.extf %0 : vector<16x32xbf16> to vector<16x32xf32>
    %c0_1 = arith.constant 0 : index
    %c0_2 = arith.constant 0 : index
    %2 = vector.load %arg2[%c0_1, %c0_2] : memref<1x32xf32, #tpu.memory_space<vmem>>, vector<1x32xf32>
    %3 = vector.broadcast %2 : vector<1x32xf32> to vector<16x32xf32>
    %4 = arith.mulf %1, %3 : vector<16x32xf32>
    %c0_3 = arith.constant 0 : index
    %c0_4 = arith.constant 0 : index
    %5 = vector.load %arg3[%c0_3, %c0_4] : memref<1x32xf32, #tpu.memory_space<vmem>>, vector<1x32xf32>
    %6 = vector.broadcast %5 : vector<1x32xf32> to vector<16x32xf32>
    %7 = arith.addf %4, %6 : vector<16x32xf32>
    %8 = arith.truncf %7 : vector<16x32xf32> to vector<16x32xbf16>
    %c0_5 = arith.constant 0 : index
    %c0_6 = arith.constant 0 : index
    %9 = vector.load %arg4[%c0_5, %c0_6] : memref<32x32xbf16, #tpu.memory_space<vmem>>, vector<32x32xbf16>
    %cst = arith.constant dense<0.000000e+00> : vector<16x32xf32>
    %10 = tpu.matmul %8, %9, %cst {dimension_numbers = #tpu.dot_dimension_numbers<[1], [0], [0], [1], [0, 0, 1, 1], [], []>} : vector<16x32xbf16>, vector<32x32xbf16>, vector<16x32xf32> -> vector<16x32xf32>
    %c0_7 = arith.constant 0 : index
    %c0_8 = arith.constant 0 : index
    %11 = vector.load %arg5[%c0_7, %c0_8] : memref<1x32xf32, #tpu.memory_space<vmem>>, vector<1x32xf32>
    %12 = vector.broadcast %11 : vector<1x32xf32> to vector<16x32xf32>
    %13 = arith.addf %10, %12 : vector<16x32xf32>
    %c0_9 = arith.constant 0 : index
    %c0_10 = arith.constant 0 : index
    %14 = vector.load %arg6[%c0_9, %c0_10] : memref<32x64xbf16, #tpu.memory_space<vmem>>, vector<32x64xbf16>
    %cst_11 = arith.constant dense<0.000000e+00> : vector<16x64xf32>
    %15 = tpu.matmul %8, %14, %cst_11 {dimension_numbers = #tpu.dot_dimension_numbers<[1], [0], [0], [1], [0, 0, 1, 1], [], []>} : vector<16x32xbf16>, vector<32x64xbf16>, vector<16x64xf32> -> vector<16x64xf32>
    %c0_12 = arith.constant 0 : index
    %c0_13 = arith.constant 0 : index
    %16 = vector.load %arg7[%c0_12, %c0_13] : memref<1x64xf32, #tpu.memory_space<vmem>>, vector<1x64xf32>
    %17 = vector.broadcast %16 : vector<1x64xf32> to vector<16x64xf32>
    %18 = arith.addf %15, %17 : vector<16x64xf32>
    %19 = arith.truncf %13 : vector<16x32xf32> to vector<16x32xbf16>
    %c0_14 = arith.constant 0 : index
    %c0_15 = arith.constant 0 : index
    %20 = vector.load %arg8[%c0_14, %c0_15] : memref<16x32xbf16, #tpu.memory_space<vmem>>, vector<16x32xbf16>
    tpu.vector_store %arg8[%c0_14, %c0_15], %19 {strides = array<i32>} : memref<16x32xbf16, #tpu.memory_space<vmem>>, vector<16x32xbf16>,
    %21 = arith.truncf %18 : vector<16x64xf32> to vector<16x64xbf16>
    %c0_16 = arith.constant 0 : index
    %c0_17 = arith.constant 0 : index
    %22 = vector.load %arg9[%c0_16, %c0_17] : memref<16x64xbf16, #tpu.memory_space<vmem>>, vector<16x64xbf16>
    tpu.vector_store %arg9[%c0_16, %c0_17], %21 {strides = array<i32>} : memref<16x64xbf16, #tpu.memory_space<vmem>>, vector<16x64xbf16>,
    return
  }
  func.func @transform_0(%arg0: i32) -> (i32, i32) {
    %c0_i32 = arith.constant 0 : i32
    %c0_i32_0 = arith.constant 0 : i32
    return %arg0, %c0_i32 : i32, i32
  }
  func.func @transform_1(%arg0: i32) -> (i32, i32) {
    %c0_i32 = arith.constant 0 : i32
    %c0_i32_0 = arith.constant 0 : i32
    %c0_i32_1 = arith.constant 0 : i32
    return %c0_i32, %c0_i32_0 : i32, i32
  }
  func.func @transform_2(%arg0: i32) -> (i32, i32) {
    %c0_i32 = arith.constant 0 : i32
    %c0_i32_0 = arith.constant 0 : i32
    %c0_i32_1 = arith.constant 0 : i32
    return %c0_i32, %c0_i32_0 : i32, i32
  }
  func.func @transform_3(%arg0: i32) -> (i32, i32) {
    %c0_i32 = arith.constant 0 : i32
    %c0_i32_0 = arith.constant 0 : i32
    %c0_i32_1 = arith.constant 0 : i32
    return %c0_i32, %c0_i32_0 : i32, i32
  }
  func.func @transform_4(%arg0: i32) -> (i32, i32) {
    %c0_i32 = arith.constant 0 : i32
    %c0_i32_0 = arith.constant 0 : i32
    %c0_i32_1 = arith.constant 0 : i32
    return %c0_i32, %c0_i32_0 : i32, i32
  }
  func.func @transform_5(%arg0: i32) -> (i32, i32) {
    %c0_i32 = arith.constant 0 : i32
    %c0_i32_0 = arith.constant 0 : i32
    %c0_i32_1 = arith.constant 0 : i32
    return %c0_i32, %c0_i32_0 : i32, i32
  }
  func.func @transform_6(%arg0: i32) -> (i32, i32) {
    %c0_i32 = arith.constant 0 : i32
    %c0_i32_0 = arith.constant 0 : i32
    %c0_i32_1 = arith.constant 0 : i32
    return %c0_i32, %c0_i32_0 : i32, i32
  }
  func.func @transform_7(%arg0: i32) -> (i32, i32) {
    %c0_i32 = arith.constant 0 : i32
    %c0_i32_0 = arith.constant 0 : i32
    return %arg0, %c0_i32 : i32, i32
  }
  func.func @transform_8(%arg0: i32) -> (i32, i32) {
    %c0_i32 = arith.constant 0 : i32
    %c0_i32_0 = arith.constant 0 : i32
    return %arg0, %c0_i32 : i32, i32
  }
}

module attributes {stable_mosaic.version = 11 : i64} {
  func.func @kernel(%arg0: i32, %arg1: memref<16x32xbf16, #tpu.memory_space<vmem>>, %arg2: memref<1x32xf32, #tpu.memory_space<vmem>>, %arg3: memref<1x32xf32, #tpu.memory_space<vmem>>, %arg4: memref<32x4xbf16, #tpu.memory_space<vmem>>, %arg5: memref<1x4xf32, #tpu.memory_space<vmem>>, %arg6: memref<16x4xf32, #tpu.memory_space<vmem>>) attributes {dimension_semantics = [#tpu.dimension_semantics<parallel>], iteration_bounds = array<i64: 1>, scalar_prefetch = 0 : i64, scratch_operands = 0 : i64, tpu.core_type = #tpu.core_type<tc>, window_params = [{transform_indices = @transform_0, window_bounds = array<i64: 16, 32>}, {pipeline_mode = #tpu.pipeline_mode<synchronous>, transform_indices = @transform_1, window_bounds = array<i64: 1, 32>}, {pipeline_mode = #tpu.pipeline_mode<synchronous>, transform_indices = @transform_2, window_bounds = array<i64: 1, 32>}, {pipeline_mode = #tpu.pipeline_mode<synchronous>, transform_indices = @transform_3, window_bounds = array<i64: 32, 4>}, {pipeline_mode = #tpu.pipeline_mode<synchronous>, transform_indices = @transform_4, window_bounds = array<i64: 1, 4>}, {transform_indices = @transform_5, window_bounds = array<i64: 16, 4>}]} {
    %c0 = arith.constant 0 : index
    %c0_0 = arith.constant 0 : index
    %0 = vector.load %arg1[%c0, %c0_0] : memref<16x32xbf16, #tpu.memory_space<vmem>>, vector<16x32xbf16>
    %1 = arith.extf %0 : vector<16x32xbf16> to vector<16x32xf32>
    %c0_1 = arith.constant 0 : index
    %c0_2 = arith.constant 0 : index
    %2 = vector.load %arg2[%c0_1, %c0_2] : memref<1x32xf32, #tpu.memory_space<vmem>>, vector<1x32xf32>
    %3 = vector.broadcast %2 : vector<1x32xf32> to vector<16x32xf32>
    %4 = arith.mulf %1, %3 : vector<16x32xf32>
    %c0_3 = arith.constant 0 : index
    %c0_4 = arith.constant 0 : index
    %5 = vector.load %arg3[%c0_3, %c0_4] : memref<1x32xf32, #tpu.memory_space<vmem>>, vector<1x32xf32>
    %6 = vector.broadcast %5 : vector<1x32xf32> to vector<16x32xf32>
    %7 = arith.addf %4, %6 : vector<16x32xf32>
    %cst = arith.constant 5.000000e-01 : f32
    %8 = vector.broadcast %cst : f32 to vector<16x32xf32>
    %9 = arith.mulf %8, %7 : vector<16x32xf32>
    %cst_5 = arith.constant 0.707106769 : f32
    %10 = vector.broadcast %cst_5 : f32 to vector<16x32xf32>
    %11 = arith.mulf %7, %10 : vector<16x32xf32>
    %12 = math.absf %11 : vector<16x32xf32>
    %cst_6 = arith.constant 0.327591091 : f32
    %13 = vector.broadcast %cst_6 : f32 to vector<16x32xf32>
    %14 = arith.mulf %13, %12 : vector<16x32xf32>
    %cst_7 = arith.constant 1.000000e+00 : f32
    %15 = vector.broadcast %cst_7 : f32 to vector<16x32xf32>
    %16 = arith.addf %15, %14 : vector<16x32xf32>
    %17 = tpu.reciprocal %16 {approx = true} : vector<16x32xf32> -> vector<16x32xf32>
    %cst_8 = arith.constant 1.06140542 : f32
    %18 = vector.broadcast %cst_8 : f32 to vector<16x32xf32>
    %19 = arith.mulf %18, %17 : vector<16x32xf32>
    %cst_9 = arith.constant -1.45315206 : f32
    %20 = vector.broadcast %cst_9 : f32 to vector<16x32xf32>
    %21 = arith.addf %19, %20 : vector<16x32xf32>
    %22 = arith.mulf %21, %17 : vector<16x32xf32>
    %cst_10 = arith.constant 1.42141378 : f32
    %23 = vector.broadcast %cst_10 : f32 to vector<16x32xf32>
    %24 = arith.addf %22, %23 : vector<16x32xf32>
    %25 = arith.mulf %24, %17 : vector<16x32xf32>
    %cst_11 = arith.constant -0.284496725 : f32
    %26 = vector.broadcast %cst_11 : f32 to vector<16x32xf32>
    %27 = arith.addf %25, %26 : vector<16x32xf32>
    %28 = arith.mulf %27, %17 : vector<16x32xf32>
    %cst_12 = arith.constant 0.254829586 : f32
    %29 = vector.broadcast %cst_12 : f32 to vector<16x32xf32>
    %30 = arith.addf %28, %29 : vector<16x32xf32>
    %31 = arith.mulf %30, %17 : vector<16x32xf32>
    %cst_13 = arith.constant 0.000000e+00 : f32
    %32 = vector.broadcast %cst_13 : f32 to vector<16x32xf32>
    %33 = arith.subf %32, %12 : vector<16x32xf32>
    %34 = arith.mulf %33, %12 : vector<16x32xf32>
    %35 = math.exp %34 : vector<16x32xf32>
    %36 = arith.mulf %31, %35 : vector<16x32xf32>
    %cst_14 = arith.constant 1.000000e+00 : f32
    %37 = vector.broadcast %cst_14 : f32 to vector<16x32xf32>
    %38 = arith.subf %37, %36 : vector<16x32xf32>
    %cst_15 = arith.constant 0.000000e+00 : f32
    %39 = vector.broadcast %cst_15 : f32 to vector<16x32xf32>
    %40 = arith.cmpf olt, %11, %39 : vector<16x32xf32>
    %cst_16 = arith.constant 0.000000e+00 : f32
    %41 = vector.broadcast %cst_16 : f32 to vector<16x32xf32>
    %42 = arith.subf %41, %38 : vector<16x32xf32>
    %43 = arith.select %40, %42, %38 : vector<16x32xi1>, vector<16x32xf32>
    %cst_17 = arith.constant 1.000000e+00 : f32
    %44 = vector.broadcast %cst_17 : f32 to vector<16x32xf32>
    %45 = arith.addf %44, %43 : vector<16x32xf32>
    %46 = arith.mulf %9, %45 : vector<16x32xf32>
    %47 = arith.truncf %46 : vector<16x32xf32> to vector<16x32xbf16>
    %c0_18 = arith.constant 0 : index
    %c0_19 = arith.constant 0 : index
    %48 = vector.load %arg4[%c0_18, %c0_19] : memref<32x4xbf16, #tpu.memory_space<vmem>>, vector<32x4xbf16>
    %cst_20 = arith.constant dense<0.000000e+00> : vector<16x4xf32>
    %49 = tpu.matmul %47, %48, %cst_20 {dimension_numbers = #tpu.dot_dimension_numbers<[1], [0], [0], [1], [0, 0, 1, 1], [], []>} : vector<16x32xbf16>, vector<32x4xbf16>, vector<16x4xf32> -> vector<16x4xf32>
    %c0_21 = arith.constant 0 : index
    %c0_22 = arith.constant 0 : index
    %50 = vector.load %arg5[%c0_21, %c0_22] : memref<1x4xf32, #tpu.memory_space<vmem>>, vector<1x4xf32>
    %51 = vector.broadcast %50 : vector<1x4xf32> to vector<16x4xf32>
    %52 = arith.addf %49, %51 : vector<16x4xf32>
    %c0_23 = arith.constant 0 : index
    %c0_24 = arith.constant 0 : index
    %53 = vector.load %arg6[%c0_23, %c0_24] : memref<16x4xf32, #tpu.memory_space<vmem>>, vector<16x4xf32>
    tpu.vector_store %arg6[%c0_23, %c0_24], %52 {strides = array<i32>} : memref<16x4xf32, #tpu.memory_space<vmem>>, vector<16x4xf32>,
    return
  }
  func.func @transform_0(%arg0: i32) -> (i32, i32) {
    %c0_i32 = arith.constant 0 : i32
    %c0_i32_0 = arith.constant 0 : i32
    return %arg0, %c0_i32 : i32, i32
  }
  func.func @transform_1(%arg0: i32) -> (i32, i32) {
    %c0_i32 = arith.constant 0 : i32
    %c0_i32_0 = arith.constant 0 : i32
    %c0_i32_1 = arith.constant 0 : i32
    return %c0_i32, %c0_i32_0 : i32, i32
  }
  func.func @transform_2(%arg0: i32) -> (i32, i32) {
    %c0_i32 = arith.constant 0 : i32
    %c0_i32_0 = arith.constant 0 : i32
    %c0_i32_1 = arith.constant 0 : i32
    return %c0_i32, %c0_i32_0 : i32, i32
  }
  func.func @transform_3(%arg0: i32) -> (i32, i32) {
    %c0_i32 = arith.constant 0 : i32
    %c0_i32_0 = arith.constant 0 : i32
    %c0_i32_1 = arith.constant 0 : i32
    return %c0_i32, %c0_i32_0 : i32, i32
  }
  func.func @transform_4(%arg0: i32) -> (i32, i32) {
    %c0_i32 = arith.constant 0 : i32
    %c0_i32_0 = arith.constant 0 : i32
    %c0_i32_1 = arith.constant 0 : i32
    return %c0_i32, %c0_i32_0 : i32, i32
  }
  func.func @transform_5(%arg0: i32) -> (i32, i32) {
    %c0_i32 = arith.constant 0 : i32
    %c0_i32_0 = arith.constant 0 : i32
    return %arg0, %c0_i32 : i32, i32
  }
}

module attributes {stable_mosaic.version = 11 : i64} {
  func.func @kernel(%arg0: i32, %arg1: memref<16x32xbf16, #tpu.memory_space<vmem>>, %arg2: memref<32x32xbf16, #tpu.memory_space<vmem>>, %arg3: memref<1x32xf32, #tpu.memory_space<vmem>>, %arg4: memref<16x32xbf16, #tpu.memory_space<vmem>>, %arg5: memref<1x32xf32, #tpu.memory_space<vmem>>, %arg6: memref<1x32xf32, #tpu.memory_space<vmem>>, %arg7: memref<16x32xbf16, #tpu.memory_space<vmem>>) attributes {dimension_semantics = [#tpu.dimension_semantics<parallel>], iteration_bounds = array<i64: 1>, scalar_prefetch = 0 : i64, scratch_operands = 0 : i64, tpu.core_type = #tpu.core_type<tc>, window_params = [{transform_indices = @transform_0, window_bounds = array<i64: 16, 32>}, {pipeline_mode = #tpu.pipeline_mode<synchronous>, transform_indices = @transform_1, window_bounds = array<i64: 32, 32>}, {pipeline_mode = #tpu.pipeline_mode<synchronous>, transform_indices = @transform_2, window_bounds = array<i64: 1, 32>}, {transform_indices = @transform_3, window_bounds = array<i64: 16, 32>}, {pipeline_mode = #tpu.pipeline_mode<synchronous>, transform_indices = @transform_4, window_bounds = array<i64: 1, 32>}, {pipeline_mode = #tpu.pipeline_mode<synchronous>, transform_indices = @transform_5, window_bounds = array<i64: 1, 32>}, {transform_indices = @transform_6, window_bounds = array<i64: 16, 32>}]} {
    %c0 = arith.constant 0 : index
    %c0_0 = arith.constant 0 : index
    %0 = vector.load %arg1[%c0, %c0_0] : memref<16x32xbf16, #tpu.memory_space<vmem>>, vector<16x32xbf16>
    %c0_1 = arith.constant 0 : index
    %c0_2 = arith.constant 0 : index
    %1 = vector.load %arg2[%c0_1, %c0_2] : memref<32x32xbf16, #tpu.memory_space<vmem>>, vector<32x32xbf16>
    %cst = arith.constant dense<0.000000e+00> : vector<16x32xf32>
    %2 = tpu.matmul %0, %1, %cst {dimension_numbers = #tpu.dot_dimension_numbers<[1], [0], [0], [1], [0, 0, 1, 1], [], []>} : vector<16x32xbf16>, vector<32x32xbf16>, vector<16x32xf32> -> vector<16x32xf32>
    %c0_3 = arith.constant 0 : index
    %c0_4 = arith.constant 0 : index
    %3 = vector.load %arg3[%c0_3, %c0_4] : memref<1x32xf32, #tpu.memory_space<vmem>>, vector<1x32xf32>
    %4 = vector.broadcast %3 : vector<1x32xf32> to vector<16x32xf32>
    %5 = arith.addf %2, %4 : vector<16x32xf32>
    %c0_5 = arith.constant 0 : index
    %c0_6 = arith.constant 0 : index
    %6 = vector.load %arg4[%c0_5, %c0_6] : memref<16x32xbf16, #tpu.memory_space<vmem>>, vector<16x32xbf16>
    %7 = arith.extf %6 : vector<16x32xbf16> to vector<16x32xf32>
    %c0_7 = arith.constant 0 : index
    %c0_8 = arith.constant 0 : index
    %8 = vector.load %arg5[%c0_7, %c0_8] : memref<1x32xf32, #tpu.memory_space<vmem>>, vector<1x32xf32>
    %9 = vector.broadcast %8 : vector<1x32xf32> to vector<16x32xf32>
    %10 = arith.mulf %7, %9 : vector<16x32xf32>
    %c0_9 = arith.constant 0 : index
    %c0_10 = arith.constant 0 : index
    %11 = vector.load %arg6[%c0_9, %c0_10] : memref<1x32xf32, #tpu.memory_space<vmem>>, vector<1x32xf32>
    %12 = vector.broadcast %11 : vector<1x32xf32> to vector<16x32xf32>
    %13 = arith.addf %10, %12 : vector<16x32xf32>
    %14 = arith.addf %5, %13 : vector<16x32xf32>
    %15 = arith.truncf %14 : vector<16x32xf32> to vector<16x32xbf16>
    %c0_11 = arith.constant 0 : index
    %c0_12 = arith.constant 0 : index
    %16 = vector.load %arg7[%c0_11, %c0_12] : memref<16x32xbf16, #tpu.memory_space<vmem>>, vector<16x32xbf16>
    tpu.vector_store %arg7[%c0_11, %c0_12], %15 {strides = array<i32>} : memref<16x32xbf16, #tpu.memory_space<vmem>>, vector<16x32xbf16>,
    return
  }
  func.func @transform_0(%arg0: i32) -> (i32, i32) {
    %c0_i32 = arith.constant 0 : i32
    %c0_i32_0 = arith.constant 0 : i32
    return %arg0, %c0_i32 : i32, i32
  }
  func.func @transform_1(%arg0: i32) -> (i32, i32) {
    %c0_i32 = arith.constant 0 : i32
    %c0_i32_0 = arith.constant 0 : i32
    %c0_i32_1 = arith.constant 0 : i32
    return %c0_i32, %c0_i32_0 : i32, i32
  }
  func.func @transform_2(%arg0: i32) -> (i32, i32) {
    %c0_i32 = arith.constant 0 : i32
    %c0_i32_0 = arith.constant 0 : i32
    %c0_i32_1 = arith.constant 0 : i32
    return %c0_i32, %c0_i32_0 : i32, i32
  }
  func.func @transform_3(%arg0: i32) -> (i32, i32) {
    %c0_i32 = arith.constant 0 : i32
    %c0_i32_0 = arith.constant 0 : i32
    return %arg0, %c0_i32 : i32, i32
  }
  func.func @transform_4(%arg0: i32) -> (i32, i32) {
    %c0_i32 = arith.constant 0 : i32
    %c0_i32_0 = arith.constant 0 : i32
    %c0_i32_1 = arith.constant 0 : i32
    return %c0_i32, %c0_i32_0 : i32, i32
  }
  func.func @transform_5(%arg0: i32) -> (i32, i32) {
    %c0_i32 = arith.constant 0 : i32
    %c0_i32_0 = arith.constant 0 : i32
    %c0_i32_1 = arith.constant 0 : i32
    return %c0_i32, %c0_i32_0 : i32, i32
  }
  func.func @transform_6(%arg0: i32) -> (i32, i32) {
    %c0_i32 = arith.constant 0 : i32
    %c0_i32_0 = arith.constant 0 : i32
    return %arg0, %c0_i32 : i32, i32
  }
}

</mosaic_0001>

<bundles_post_ra>
// kernel: tpu_custom_call.1
= control target key start
LH: loop header
LB: loop body
LE: loop exit
PB: predicated region body
PF: predicated region fallthrough
CT: control target
= control target key end

     0   :  { %6 = vsyncpa [#allocation3], 0  ;;  %s286_s0 = inlined_call_operand.hbm [shape: f32[8,128], index: 0, kind: input, shape index: {}]   ;;  %s287_s1 = inlined_call_operand.hbm [shape: f32[8,128], index: 1, kind: output, shape index: {}]  }
   0x1   :  { %7 = vsyncpa [#allocation4], 0  ;;  %s269_s6 = smov 0  }
   0x2 LB: > { %s148_s7 = sadd.s32 4294967295, %s255_s6   ;;  %p149_p0 = scmp.ge.s32.totalorder %s255_s6, 1  ;;  %s255_s6 = sphi %s269_s6, %s13_s6  }
   0x3   : > { %p60_p1 = scmp.lt.s32.totalorder %s255_s6, 3  ;;  %s72_s10 = sshll.u32 %s286_s0, 4  ;;  %s73_s10 = int_to_ptr.hbm [resolvable:$true] %s72_s10 }
   0x4   : > { %p169_p3 = scmp.eq.s32.totalorder %s148_s7, 0  ;;  %s257_s11 = smov [#allocation2]  }
   0x5   : > { %p61_p2 = pnand %p149_p0, %p60_p1  ;;  %s74_s12 = sshll.u32 %s257_s11, 4  ;;  %s75_s12 = int_to_ptr.vmem [resolvable:$true] %s74_s12 }
   0x7   : > { %p165_p4 = pneg %p61_p2  ;;  %87 = sbr.rel (%p61_p2) target bundleno = 19 (0x13), region = 24 }
   0x9   : > { %p166_p5 = pnand %p169_p3, %p165_p4 }
   0xb   : > { %168 = dma.hbm_to_vmem [thread:$0]  (!%p166_p5), %s73_s10, 128, %s75_s12, [#allocation3]  }
   0xc   : > { %246 = dma.done.wait (%p169_p3), [#allocation3], 128  }
   0xd   : > { %248 = vsyncadd (%p169_p3), [#allocation3], 4294967168  ;;  %s258_s13 = smov [#allocation5]   ;;  %s108_s17 = sshll.u32 %s287_s1, 4  ;;  %v98_v0 = vld [vmem:[#allocation2] sm:$0xff]  ;;  %s109_s17 = int_to_ptr.hbm [resolvable:$true] %s108_s17 }
   0xe   : > { %s106_s14 = sshll.u32 %s258_s13, 4  ;;  %p171_p6 = scmp.eq.s32.totalorder %s148_s7, 1  ;;  %99 = vst [vmem:[#allocation5] sm:$0xff] %v98_v0  ;;  %s107_s14 = int_to_ptr.vmem [resolvable:$true] %s106_s14 }
  0x10   : > { %162 = dma.vmem_to_hbm [thread:$0]  (%p171_p6), %s107_s14, 128, %s109_s17, [#allocation4]  }
  0x11   : > { %250 = dma.done.wait (%p171_p6), [#allocation4], 128  }
  0x12   : > { %252 = vsyncadd (%p171_p6), [#allocation4], 4294967168 }
  0x13 PF: > { %s13_s6 = sadd.s32 1, %s255_s6  }
  0x14   : > { %p10_p7 = scmp.ge.s32.totalorder %s13_s6, 4  }
  0x16   :  { %12 = sbr.rel (!%p10_p7) target bundleno = 2 (0x2), region = 53 }
  0x1b   :  { %122 = vsyncpa [#allocation3], 1 }
  0x1c   :  { %124 = vsyncpa [#allocation3 + $0x1], 1 }
  0x1d   :  { %125 = vsyncpa [#allocation4], 1 }
  0x1e   :  { %127 = vsyncpa [#allocation4 + $0x1], 1 }

// kernel: ts_transformer_forward.15
= control target key start
LH: loop header
LB: loop body
LE: loop exit
PB: predicated region body
PF: predicated region fallthrough
CT: control target
= control target key end

     0   :  { %12 = vsyncpa [#allocation3], 0  ;;  %s345_s0 = inlined_call_operand.vmem [shape: bf16[16,32], index: 0, kind: input, shape index: {}]   ;;  %s346_s1 = inlined_call_operand.hbm [shape: bf16[32,32], index: 1, kind: input, shape index: {}]   ;;  %s347_s2 = inlined_call_operand.hbm [shape: f32[1,32], index: 2, kind: input, shape index: {}]   ;;  %s348_s3 = inlined_call_operand.vmem [shape: bf16[32,64], index: 3, kind: input, shape index: {}]   ;;  %s349_s4 = inlined_call_operand.hbm [shape: f32[1,64], index: 4, kind: input, shape index: {}]   ;;  %s350_s5 = inlined_call_operand.vmem [shape: bf16[16,32], index: 5, kind: output, shape index: {0}]   ;;  %s351_s6 = inlined_call_operand.vmem [shape: bf16[16,64], index: 6, kind: output, shape index: {1}]  }
   0x1   :  { %13 = vsyncpa [#allocation5], 0  ;;  %s34_s23 = sshll.u32 %s347_s2, 4  ;;  %s275_s24 = smov [#allocation4]   ;;  %s35_s23 = int_to_ptr.hbm [resolvable:$true] %s34_s23 }
   0x2   :  { %s36_s25 = sshll.u32 %s275_s24, 4  ;;  %s20_s28 = sshll.u32 %s346_s1, 4  ;;  %s37_s25 = int_to_ptr.vmem [resolvable:$true] %s36_s25  ;;  %s21_s28 = int_to_ptr.hbm [resolvable:$true] %s20_s28 }
   0x3   :  { %39 = dma.hbm_to_vmem [thread:$0]  %s35_s23, 16, %s37_s25, [#allocation5]  }
   0x4   :  { %s276_s29 = smov [#allocation2]   ;;  %s277_s7 = smov 64  }
   0x5   :  { %s22_s30 = sshll.u32 %s276_s29, 4  ;;  %s278_s8 = smov 4   ;;  %s23_s30 = int_to_ptr.vmem [resolvable:$true] %s22_s30 }
   0x6   :  { %28 = dma.hbm_to_vmem [thread:$0]  %s21_s28, 256, %s23_s30, [#allocation3], %s277_s7, %s277_s7, %s278_s8  }
   0x7   :  { %s47_s2 = sshll.u32 %s349_s4, 4  ;;  %s279_s11 = smov [#allocation6]   ;;  %s48_s2 = int_to_ptr.hbm [resolvable:$true] %s47_s2 }
   0x8   :  { %s49_s12 = sshll.u32 %s279_s11, 4  ;;  %s50_s12 = int_to_ptr.vmem [resolvable:$true] %s49_s12 }
   0x9   :  { %52 = dma.hbm_to_vmem [thread:$0]  %s48_s2, 16, %s50_s12, [#allocation5]  }
   0xa   :  { %271 = dma.done.wait [#allocation3], 256  }
   0xb   :  { %272 = vsyncadd [#allocation3], 4294967040 }
   0xc   :  { %273 = dma.done.wait [#allocation5], 32  }
   0xd   :  { %274 = vsyncadd [#allocation5], 4294967264  ;;  %v189_v0 = vld [vmem:[#allocation2 + $0x8] sm:$0xff]  ;;  %v188_v2 = vld [vmem:[#allocation2] sm:$0xff]  ;;  %vm93_vm0 = vcmask 261120   ;;  %vm147_vm1 = vcmask 257024  }
   0xe   :  { %v191_v1 = vld [vmem:[%s348_s3 + $0x8] sm:$0xff]  ;;  %103 = vmatpush.bf16.msra.mxu0 %v189_v0  ;;  %v190_v3 = vld [vmem:[%s348_s3] sm:$0xff]  ;;  %v197_v5 = vld [vmem:[#allocation4] ss:$0 sm:$0xff]  ;;  %vm152_vm2 = vcmask 519168  }
   0xf   :  { %137 = vmatpush.bf16.msra.mxu1 %v191_v1  ;;  %v187_v4 = vld [vmem:[%s345_s0] sm:$0xff]  ;;  %v198_v6 = vld [vmem:[#allocation6] ss:$0 sm:$0xff] }
  0x12   :  { %104 = vmatpush.bf16.msra.mxu0 %v188_v2 }
  0x13   :  { %138 = vmatpush.bf16.msra.mxu1 %v190_v3 }
  0x15   :  { %177 = vmatmul.msk.bf16.vlgmr.msra.gmra.mxu0 %vm93_vm0, %v187_v4 }
  0x16   :  { %186 = vmatmul.msk.bf16.vlgmr.msra.gmra.mxu1 %vm93_vm0, %v187_v4 }
  0x92   :  { %v106_v7 = vpop.f32.mrf.mxu0 }
  0x93   :  { %v140_v8 = vpop.f32.mrf.mxu1  ;;  %v107_v9 = vadd.f32 %v197_v5, %v106_v7 }
  0x94   :  { %v141_v10 = vadd.f32 %v198_v6, %v140_v8 }
  0x95   :  { %v145_v11 = vpack.c.bf16 %v107_v9, %v107_v9 }
  0x96   :  { %v150_v12 = vpack.c.bf16 %v141_v10, %v141_v10 }
  0x97   :  { %148 = vst.msk [vmem:[%s350_s5] sm:$0xf] %vm147_vm1, %v145_v11 }
  0x98   :  { %153 = vst.msk [vmem:[%s351_s6] sm:$0xf] %vm152_vm2, %v150_v12 }
  0x9a   :  { %v108_v13 = vpop.f32.mrf.mxu0 }
  0x9b   :  { %v142_v14 = vpop.f32.mrf.mxu1  ;;  %v109_v15 = vadd.f32 %v197_v5, %v108_v13 }
  0x9c   :  { %v143_v16 = vadd.f32 %v198_v6, %v142_v14 }
  0x9d   :  { %v146_v17 = vpack.c.bf16 %v109_v15, %v109_v15 }
  0x9e   :  { %v151_v18 = vpack.c.bf16 %v143_v16, %v143_v16 }
  0x9f   :  { %149 = vst.msk [vmem:[%s350_s5 + $0x4] sm:$0xf] %vm147_vm1, %v146_v17 }
  0xa0   :  { %154 = vst.msk [vmem:[%s351_s6 + $0x4] sm:$0xf] %vm152_vm2, %v151_v18 }
  0xa1   :  { %163 = vsyncpa [#allocation3], 1 }
  0xa2   :  { %164 = vsyncpa [#allocation5], 1 }

// kernel: ts_transformer_forward.14
= control target key start
LH: loop header
LB: loop body
LE: loop exit
PB: predicated region body
PF: predicated region fallthrough
CT: control target
= control target key end

     0   :  { %9 = vsyncpa [#allocation3], 0  ;;  %s502_s15 = smov 0   ;;  %s504_s16 = smov 0   ;;  %s545_s0 = inlined_call_operand.vmem [shape: f32[2,8,4], index: 0, kind: input, shape index: {}]   ;;  %s546_s1 = inlined_call_operand.hbm [shape: f32[8,32], index: 1, kind: input, shape index: {}]   ;;  %s547_s2 = inlined_call_operand.vmem [shape: bf16[4,32], index: 2, kind: input, shape index: {}]   ;;  %s548_s3 = inlined_call_operand.vmem [shape: f32[1,32], index: 3, kind: input, shape index: {}]   ;;  %s549_s4 = inlined_call_operand.vmem [shape: bf16[2,8,32], index: 4, kind: output, shape index: {}]  }
   0x1   :  { %s506_s17 = smov 0  }
   0x2 LB: > { %s370_s18 = sadd.s32 4294967295, %s474_s17   ;;  %s27_s19 = sadd.s32 1, %s470_s16  ;;  %s474_s17 = sphi %s506_s17, %s15_s17   ;;  %s470_s16 = sphi %s504_s16, %s551_s16   ;;  %s466_s15 = sphi %s502_s15, %s550_s15  }
   0x3   : > { %p29_p0 = scmp.ge.s32.totalorder %s27_s19, 2  ;;  %p372_p1 = scmp.ge.s32.totalorder %s474_s17, 1 }
   0x4   : > { %p156_p2 = scmp.lt.s32.totalorder %s474_s17, 3  ;;  %p390_p4 = scmp.eq.s32.totalorder %s370_s18, 0 }
   0x5   : > { %s553_s19 = smov (%p29_p0, %s27_s19), 0  ;;  %s170_s22 = sshll.u32 %s546_s1, 4  ;;  %s171_s22 = int_to_ptr.hbm [resolvable:$true] %s170_s22 }
   0x6   : > { %p157_p3 = pnand %p372_p1, %p156_p2  ;;  %s476_s23 = smov [#allocation2]  }
   0x7   : > { %s172_s24 = sshll.u32 %s476_s23, 4  ;;  %s173_s24 = int_to_ptr.vmem [resolvable:$true] %s172_s24 }
   0x8   : > { %p386_p5 = pneg %p157_p3  ;;  %201 = sbr.rel (%p157_p3) target bundleno = 157 (0x9d), region = 36 }
   0xa   : > { %p387_p6 = pnand %p390_p4, %p386_p5 }
   0xc   : > { %389 = dma.hbm_to_vmem [thread:$0]  (!%p387_p6), %s171_s22, 128, %s173_s24, [#allocation3]  }
   0xd   : > { %461 = dma.done.wait (%p390_p4), [#allocation3], 128  }
   0xe   : > { %463 = vsyncadd (%p390_p4), [#allocation3], 4294967168  ;;  %p232_p7 = scmp.lt.s32.totalorder %s466_s15, 1  ;;  %vm258_vm0 = vcmask 1041408   ;;  %v249_v0 = vld [vmem:[%s547_s2] sm:$0x3] }
   0xf   : > { %v260_v2 = vsel %vm258_vm0, %v249_v0, 0  ;;  %vm254_vm1 = vcmask 31744   ;;  %v417_v4 = vld [vmem:[%s548_s3] ss:$0 sm:$0xff]  ;;  %vm279_vm2 = vcmask 257024  }
  0x10   : > { %s555_s15 = smov (!%p232_p7, %s466_s15), 1  ;;  %269 = vmatpush.bf16.msra.mxu0 %v260_v2  ;;  %v276_v7 = vld [vmem:[#allocation2] sm:$0xff] }
  0x11   : > { %s377_s25 = sshll.u32 %s555_s15, 3  ;;  %s378_s7 = sshll.u32 %s555_s15, 2 }
  0x12   : > { %s238_s28 = scalar_lea.vmem %s545_s0, %s377_s25  ;;  %s245_s10 = scalar_lea.vmem %s549_s4, %s378_s7 }
  0x13   : > { %v247_v1 = vld [vmem:[%s238_s28] sm:$0xff] }
  0x14   : > { %v248_v3 = vpack.c.bf16 %v247_v1, %v247_v1 }
  0x16   : > { %379 = vmatmul.msk.bf16.vlgmr.msra.gmra.mxu0 %vm254_vm1, %v248_v3 }
  0x93   : > { %v271_v5 = vpop.f32.mrf.mxu0 }
  0x94   : > { %v272_v6 = vadd.f32 %v417_v4, %v271_v5 }
  0x96   : > { %v275_v8 = vmul.f32 5.656854, %v272_v6 }
  0x98   : > { %v277_v9 = vadd.f32 %v276_v7, %v275_v8 }
  0x9a   : > { %v278_v10 = vpack.c.bf16 %v277_v9, %v277_v9 }
  0x9b   : > { %v273_v11 = vpop.f32.mrf.mxu0 }
  0x9c   : > { %280 = vst.msk [vmem:[%s245_s10] sm:$0xf] %vm279_vm2, %v278_v10 }
  0x9d PF: > { %s15_s17 = sadd.s32 1, %s474_s17   ;;  %s550_s15 = smov %s470_s16 }
  0x9e   : > { %p12_p8 = scmp.ge.s32.totalorder %s15_s17, 4   ;;  %s551_s16 = smov %s553_s19 }
  0xa0   :  { %14 = sbr.rel (!%p12_p8) target bundleno = 2 (0x2), region = 72 }
  0xa5   :  { %306 = vsyncpa [#allocation3], 1 }
  0xa6   :  { %308 = vsyncpa [#allocation3 + $0x1], 1 }

// kernel: ts_transformer_forward.16
= control target key start
LH: loop header
LB: loop body
LE: loop exit
PB: predicated region body
PF: predicated region fallthrough
CT: control target
= control target key end

     0   :  { %s704_s12 = smov 0   ;;  %s706_s13 = smov 0   ;;  %s782_s0 = inlined_call_operand.vmem [shape: bf16[2,8,32], index: 0, kind: input, shape index: {}]   ;;  %s783_s1 = inlined_call_operand.vmem [shape: bf16[2,8,64], index: 1, kind: input, shape index: {}]   ;;  %s784_s2 = inlined_call_operand.vmem [shape: f32[2,1,8], index: 2, kind: input, shape index: {}]   ;;  %s785_s3 = inlined_call_operand.vmem [shape: bf16[2,8,32], index: 3, kind: output, shape index: {}]  }
   0x1   :  { %s708_s14 = smov 0  }
   0x2 LB: > { %s25_s15 = sadd.s32 1, %s668_s13  ;;  %p585_p0 = scmp.ge.s32.totalorder %s672_s14, 1  ;;  %s672_s14 = sphi %s708_s14, %s13_s14   ;;  %s668_s13 = sphi %s706_s13, %s787_s13   ;;  %s664_s12 = sphi %s704_s12, %s786_s12  }
   0x3   : > { %p27_p1 = scmp.ge.s32.totalorder %s25_s15, 2  ;;  %p172_p2 = scmp.lt.s32.totalorder %s672_s14, 3 }
   0x5   : > { %s789_s15 = smov (%p27_p1, %s25_s15), 0  ;;  %p173_p3 = pnand %p585_p0, %p172_p2 }
   0x6   : > { %p207_p4 = scmp.lt.s32.totalorder (!%p173_p3), %s664_s12, 1  ;;  %s674_s26 = smov (!%p173_p3), 112  }
   0x7   : > { %176 = sbr.rel (%p173_p3) target bundleno = 828 (0x33c), region = 32  ;;  %s675_s27 = smov (!%p173_p3), 120  }
   0x8   : > { %s676_s28 = smov (!%p173_p3), 104   ;;  %s677_s29 = smov (!%p173_p3), 96  }
   0x9   : > { %s678_s30 = smov (!%p173_p3), 88   ;;  %s679_s4 = smov (!%p173_p3), 72  }
   0xa   : > { %s680_s5 = smov (!%p173_p3), 80   ;;  %s681_s6 = smov (!%p173_p3), 8  }
   0xb   : > { %s682_s7 = smov (!%p173_p3), 24   ;;  %s683_s8 = smov (!%p173_p3), 16  }
   0xc   : > { %s791_s12 = smov (!%p207_p4, %s664_s12), 1  ;;  %vm235_vm0 = vcmask 64512   ;;  %vm273_vm1 = vcmask 1043456   ;;  %vm356_vm2 = vcmask 130112   ;;  %vm418_vm3 = vcmask 195712  }
   0xd   : > { %s722_s16 = sshll.u32 %s791_s12, 2  ;;  %s220_s19 = scalar_lea.vmem %s784_s2, %s791_s12  ;;  %vm480_vm4 = vcmask 261312   ;;  %vm484_vm5 = vcmask 257024  }
   0xe   : > { %s217_s22 = scalar_lea.vmem %s783_s1, %s722_s16  ;;  %s213_s25 = scalar_lea.vmem %s782_s0, %s722_s16  ;;  %v633_v8 = vld [vmem:[%s220_s19] ss:$0 sm:$0xff] }
   0xf   : > { %v230_v0 = vld [vmem:[%s217_s22] sm:$0xf]  ;;  %s227_s11 = scalar_lea.vmem %s785_s3, %s722_s16 }
  0x10   : > { %v240_v1 = vsel %vm235_vm0, %v230_v0, 0  ;;  %v266_v2 = vunpack.c.l.b16 %v230_v0  ;;  %v229_v4 = vld [vmem:[%s213_s25] sm:$0xf] }
  0x11   : > { %249 = vmatpush.bf16.xpose.msra.mxu0 %v240_v1  ;;  %v294_v5 = vunpack.c.l.b16 %v229_v4 }
  0x12   : > { %v736_v3 = vpack.c.b16 %v266_v2, %v266_v2 }
  0x13   : > { %v295_v6 = vpack.c.b16 %v294_v5, %v294_v5 }
  0x14   : > { %360 = vrot.lane.b32.xlu2 %v736_v3, %s674_s26 }
  0x15   : > { %296 = vrot.lane.b32.xlu1 %v295_v6, %s675_s27 }
  0x18   : > { %589 = vmatmul.msk.bf16.vlgmr.msra.gmra.mxu0 %vm235_vm0, %v229_v4 }
  0x1c   : > { %422 = vrot.lane.b32.xlu2 %v736_v3, %s676_s28 }
  0x1d   : > { %268 = vrot.lane.b32.xlu1 %v736_v3, %s677_s29 }
  0x24   : > { %420 = vrot.lane.b32.xlu2 %v295_v6, %s676_s28 }
  0x25   : > { %358 = vrot.lane.b32.xlu1 %v295_v6, %s674_s26 }
  0x2c   : > { %329 = vrot.lane.b32.xlu2 %v736_v3, %s678_s30 }
  0x6e   : > { %v361_v7 = vpop.permute.xlu2 %360 }
  0x6f   : > { %v366_v19 = vsel %vm235_vm0, %v361_v7, 0 }
  0x76   : > { %v423_v10 = vpop.permute.xlu2 %422 }
  0x77   : > { %v428_v12 = vsel %vm235_vm0, %v423_v10, 0 }
  0x78   : > { %437 = vmatpush.bf16.xpose.msrb.mxu0 %v428_v12 }
  0x7e   : > { %v421_v15 = vpop.permute.xlu2 %420 }
  0x7f   : > { %595 = vmatmul.msk.bf16.vlgmr.msrb.gmra.mxu0 %vm235_vm0, %v421_v15 }
  0x86   : > { %v330_v42 = vpop.permute.xlu2 %329 }
  0x87   : > { %v297_v16 = vpop.permute.xlu1 %296  ;;  %v335_v43 = vsel %vm273_vm1, %v330_v42, 0 }
  0x88   : > { %344 = vmatpush.bf16.msra.mxu3 %v335_v43 }
  0x8f   : > { %v269_v17 = vpop.permute.xlu1 %268 }
  0x90   : > { %v275_v18 = vsel %vm273_vm1, %v269_v17, 0 }
  0x91   : > { %284 = vmatpush.bf16.msra.mxu1 %v275_v18 }
  0x95   : > { %v251_v9 = vpop.f32.mrf.mxu0  ;;  %375 = vmatpush.bf16.xpose.msrb.mxu1 %v366_v19 }
  0x96   : > { %v252_v11 = vadd.f32 %v633_v8, %v251_v9 }
  0x97   : > { %v359_v31 = vpop.permute.xlu1 %358 }
  0x98   : > { %v255_v13 = vsel %vm235_vm0, %v252_v11, -inf }
  0x99   : > { %256 = vmax.xlane.f32.xlu0 %v255_v13 }
  0x9d   : > { %v253_v14 = vpop.f32.mrf.mxu0 }
  0xad   : > { %298 = vrot.lane.b32.xlu0 %v736_v3, %s675_s27 }
  0xfc   : > { %v439_v25 = vpop.f32.mrf.mxu0 }
  0xfd   : > { %v440_v26 = vadd.f32 %v633_v8, %v439_v25 }
  0xff   : > { %v443_v27 = vsel %vm235_vm0, %v440_v26, -inf }
 0x100   : > { %444 = vmax.xlane.f32.xlu2 %v443_v27 }
 0x104   : > { %v441_v30 = vpop.f32.mrf.mxu0 }
 0x10c   : > { %v257_v20 = vpop.xlane.xlu0 %256 }
 0x10d   : > { %v258_v21 = vsub.f32 %v252_v11, %v257_v20 }
 0x10f   : > { %v259_v22 = vmul.f32 1.442695, %v258_v21 }
 0x111   : > { %634 = vpow2.f32 %v259_v22 }
 0x117   : > { %v635_v23 = vpop.eup %634 }
 0x118   : > { %v264_v24 = vpack.c.bf16 %v635_v23, %v635_v23  ;;  %v261_v44 = vsel %vm235_vm0, %v635_v23, 0.0 }
 0x11a   : > { %590 = vmatmul.msk.bf16.vlgmr.msra.gmra.mxu1 %vm235_vm0, %v264_v24 }
 0x11f   : > { %v299_v28 = vpop.permute.xlu0 %298 }
 0x120   : > { %v304_v29 = vsel %vm235_vm0, %v299_v28, 0 }
 0x121   : > { %313 = vmatpush.bf16.xpose.msra.mxu2 %v304_v29 }
 0x128   : > { %591 = vmatmul.msk.bf16.vlgmr.msra.gmra.mxu2 %vm235_vm0, %v297_v16 }
 0x12a   : > { %593 = vmatmul.msk.bf16.vlgmr.msrb.gmra.mxu1 %vm235_vm0, %v359_v31 }
 0x173   : > { %v445_v45 = vpop.xlane.xlu2 %444 }
 0x174   : > { %v446_v48 = vsub.f32 %v440_v26, %v445_v45 }
 0x176   : > { %v447_v52 = vmul.f32 1.442695, %v446_v48 }
 0x197   : > { %v286_v32 = vpop.f32.mrf.mxu1 }
 0x19f   : > { %v288_v33 = vpop.f32.mrf.mxu1 }
 0x1a7   : > { %v377_v34 = vpop.f32.mrf.mxu1 }
 0x1a8   : > { %v378_v35 = vadd.f32 %v633_v8, %v377_v34 }
 0x1aa   : > { %v381_v36 = vsel %vm235_vm0, %v378_v35, -inf }
 0x1ab   : > { %382 = vmax.xlane.f32.xlu0 %v381_v36  ;;  %v315_v37 = vpop.f32.mrf.mxu2 }
 0x1ac   : > { %v316_v38 = vadd.f32 %v633_v8, %v315_v37 }
 0x1ae   : > { %v319_v39 = vsel %vm235_vm0, %v316_v38, -inf }
 0x1af   : > { %v379_v40 = vpop.f32.mrf.mxu1  ;;  %320 = vmax.xlane.f32.xlu1 %v319_v39 }
 0x1b3   : > { %v317_v41 = vpop.f32.mrf.mxu2 }
 0x1bf   : > { %453 = vrot.lane.b32.xlu0 %v736_v3, %s679_s4 }
 0x1c8   : > { %391 = vrot.lane.b32.xlu1 %v736_v3, %s680_s5 }
 0x1e9   : > { %262 = vadd.xlane.f32.xlu0 %v261_v44 }
 0x21e   : > { %v383_v46 = vpop.xlane.xlu0 %382 }
 0x21f   : > { %v384_v50 = vsub.f32 %v378_v35, %v383_v46 }
 0x221   : > { %v385_v53 = vmul.f32 1.442695, %v384_v50 }
 0x222   : > { %v321_v47 = vpop.xlane.xlu1 %320 }
 0x223   : > { %v322_v49 = vsub.f32 %v316_v38, %v321_v47 }
 0x225   : > { %v323_v51 = vmul.f32 1.442695, %v322_v49 }
 0x227   : > { %636 = vpow2.f32 %v323_v51 }
 0x228   : > { %638 = vpow2.f32 %v447_v52 }
 0x229   : > { %640 = vpow2.f32 %v385_v53 }
 0x22d   : > { %v637_v54 = vpop.eup %636 }
 0x22e   : > { %v325_v55 = vsel %vm235_vm0, %v637_v54, 0.0  ;;  %v328_v56 = vpack.c.bf16 %v637_v54, %v637_v54  ;;  %v639_v57 = vpop.eup %638 }
 0x22f   : > { %326 = vadd.xlane.f32.xlu2 %v325_v55  ;;  %v641_v60 = vpop.eup %640  ;;  %v452_v61 = vpack.c.bf16 %v639_v57, %v639_v57  ;;  %v449_v1 = vsel %vm235_vm0, %v639_v57, 0.0 }
 0x230   : > { %592 = vmatmul.msk.bf16.vlgmr.msra.gmra.mxu3 %vm235_vm0, %v328_v56  ;;  %v387_v62 = vsel %vm235_vm0, %v641_v60, 0.0  ;;  %v390_v2 = vpack.c.bf16 %v641_v60, %v641_v60 }
 0x231   : > { %v454_v58 = vpop.permute.xlu0 %453 }
 0x232   : > { %v459_v59 = vsel %vm273_vm1, %v454_v58, 0 }
 0x233   : > { %468 = vmatpush.bf16.msrb.mxu2 %v459_v59 }
 0x236   : > { %596 = vmatmul.msk.bf16.vlgmr.msrb.gmra.mxu2 %vm235_vm0, %v452_v61 }
 0x237   : > { %388 = vadd.xlane.f32.xlu2 %v387_v62 }
 0x23a   : > { %v392_v63 = vpop.permute.xlu1 %391 }
 0x23b   : > { %v397_v0 = vsel %vm273_vm1, %v392_v63, 0 }
 0x23c   : > { %406 = vmatpush.bf16.msrb.mxu3 %v397_v0 }
 0x23f   : > { %450 = vadd.xlane.f32.xlu2 %v449_v1 }
 0x240   : > { %594 = vmatmul.msk.bf16.vlgmr.msrb.gmra.mxu3 %vm235_vm0, %v390_v2 }
 0x25c   : > { %v263_v3 = vpop.xlane.xlu0 %262 }
 0x25d   : > { %642 = vrcp.f32 %v263_v3 }
 0x263   : > { %v643_v4 = vpop.eup %642 }
 0x264   : > { %v291_v5 = vmul.f32 %v643_v4, %v286_v32 }
 0x266   : > { %292 = vst.msk [vmem:[#allocation2] sm:$0xff] %vm235_vm0, %v291_v5 }
 0x2a2   : > { %v327_v6 = vpop.xlane.xlu2 %326 }
 0x2a3   : > { %644 = vrcp.f32 %v327_v6 }
 0x2a9   : > { %v645_v9 = vpop.eup %644 }
 0x2aa   : > { %v389_v7 = vpop.xlane.xlu2 %388 }
 0x2b2   : > { %v451_v8 = vpop.xlane.xlu2 %450 }
 0x2b3   : > { %646 = vrcp.f32 %v451_v8  ;;  %v346_v10 = vpop.f32.mrf.mxu3 }
 0x2b4   : > { %v351_v11 = vmul.f32 %v645_v9, %v346_v10  ;;  %648 = vrcp.f32 %v389_v7 }
 0x2b6   : > { %353 = vrot.lane.b32.xlu1 %v351_v11, %s681_s6 }
 0x2b9   : > { %v647_v12 = vpop.eup %646  ;;  %v470_v13 = vpop.f32.mrf.mxu2 }
 0x2ba   : > { %v475_v15 = vmul.f32 %v647_v12, %v470_v13  ;;  %v649_v17 = vpop.eup %648 }
 0x2bb   : > { %v348_v14 = vpop.f32.mrf.mxu3 }
 0x2be   : > { %477 = vrot.lane.b32.xlu1 %v475_v15, %s682_s7 }
 0x2c1   : > { %v472_v16 = vpop.f32.mrf.mxu2 }
 0x2c3   : > { %v408_v18 = vpop.f32.mrf.mxu3 }
 0x2c4   : > { %v413_v19 = vmul.f32 %v649_v17, %v408_v18 }
 0x2c6   : > { %415 = vrot.lane.b32.xlu2 %v413_v19, %s683_s8 }
 0x2cb   : > { %v410_v20 = vpop.f32.mrf.mxu3 }
 0x320   : > { %v416_v22 = vpop.permute.xlu2 %415 }
 0x328   : > { %v354_v21 = vpop.permute.xlu1 %353 }
 0x329   : > { %357 = vst.msk [vmem:[#allocation2] sm:$0xff] %vm356_vm2, %v354_v21 }
 0x32a   : > { %419 = vst.msk [vmem:[#allocation2] sm:$0xff] %vm418_vm3, %v416_v22 }
 0x330   : > { %v478_v23 = vpop.permute.xlu1 %477 }
 0x331   : > { %481 = vst.msk [vmem:[#allocation2] sm:$0xff] %vm480_vm4, %v478_v23 }
 0x338   : > { %v482_v24 = vld [vmem:[#allocation2] sm:$0xff] }
 0x339   : > { %v483_v25 = vpack.c.bf16 %v482_v24, %v482_v24 }
 0x33b   : > { %485 = vst.msk [vmem:[%s227_s11] sm:$0xf] %vm484_vm5, %v483_v25 }
 0x33c PF: > { %s13_s14 = sadd.s32 1, %s672_s14   ;;  %s786_s12 = smov %s668_s13 }
 0x33d   : > { %p10_p5 = scmp.ge.s32.totalorder %s13_s14, 4   ;;  %s787_s13 = smov %s789_s15 }
 0x33f   :  { %12 = sbr.rel (!%p10_p5) target bundleno = 2 (0x2), region = 68 }

// kernel: ts_transformer_forward.17
= control target key start
LH: loop header
LB: loop body
LE: loop exit
PB: predicated region body
PF: predicated region fallthrough
CT: control target
= control target key end

     0   :  { %9 = vsyncpa [#allocation3], 0  ;;  %s234_s0 = inlined_call_operand.vmem [shape: bf16[16,32], index: 0, kind: input, shape index: {}]   ;;  %s235_s1 = inlined_call_operand.hbm [shape: bf16[32,32], index: 1, kind: input, shape index: {}]   ;;  %s236_s2 = inlined_call_operand.hbm [shape: f32[1,32], index: 2, kind: input, shape index: {}]   ;;  %s237_s3 = inlined_call_operand.vmem [shape: bf16[16,32], index: 3, kind: input, shape index: {}]   ;;  %s238_s4 = inlined_call_operand.vmem [shape: bf16[16,32], index: 4, kind: output, shape index: {}]  }
   0x1   :  { %s17_s17 = sshll.u32 %s235_s1, 4  ;;  %s18_s17 = int_to_ptr.hbm [resolvable:$true] %s17_s17 }
   0x2   :  { %10 = vsyncpa [#allocation5], 0  ;;  %s187_s18 = smov [#allocation2]   ;;  %s31_s22 = sshll.u32 %s236_s2, 4  ;;  %s32_s22 = int_to_ptr.hbm [resolvable:$true] %s31_s22 }
   0x3   :  { %s19_s19 = sshll.u32 %s187_s18, 4  ;;  %s188_s23 = smov 64   ;;  %s20_s19 = int_to_ptr.vmem [resolvable:$true] %s19_s19 }
   0x4   :  { %s189_s24 = smov 4   ;;  %s190_s25 = smov [#allocation4]  }
   0x5   :  { %25 = dma.hbm_to_vmem [thread:$0]  %s18_s17, 256, %s20_s19, [#allocation3], %s188_s23, %s188_s23, %s189_s24  }
   0x6   :  { %s33_s26 = sshll.u32 %s190_s25, 4  ;;  %s34_s26 = int_to_ptr.vmem [resolvable:$true] %s33_s26 }
   0x7   :  { %36 = dma.hbm_to_vmem [thread:$0]  %s32_s22, 16, %s34_s26, [#allocation5]  }
   0x8   :  { %183 = dma.done.wait [#allocation3], 256  }
   0x9   :  { %184 = vsyncadd [#allocation3], 4294967040 }
   0xa   :  { %185 = dma.done.wait [#allocation5], 16  }
   0xb   :  { %186 = vsyncadd [#allocation5], 4294967280  ;;  %v125_v0 = vld [vmem:[#allocation2 + $0x8] sm:$0xff]  ;;  %v124_v1 = vld [vmem:[#allocation2] sm:$0xff]  ;;  %vm75_vm0 = vcmask 261120   ;;  %vm101_vm1 = vcmask 257024  }
   0xc   :  { %85 = vmatpush.bf16.msra.mxu0 %v125_v0  ;;  %v123_v2 = vld [vmem:[%s234_s0] sm:$0xff]  ;;  %v134_v4 = vld [vmem:[#allocation4] ss:$0 sm:$0xff] }
   0xd   :  { %v127_v3 = vld [vmem:[%s237_s3] sm:$0xff]  }
   0xe   :  { %v128_v5 = vunpack.c.l.bf16 %v127_v3  ;;  %v129_v10 = vunpack.c.h.bf16 %v127_v3 }
  0x10   :  { %86 = vmatpush.bf16.msra.mxu0 %v124_v1 }
  0x13   :  { %122 = vmatmul.msk.bf16.vlgmr.msra.gmra.mxu0 %vm75_vm0, %v123_v2 }
  0x90   :  { %v88_v6 = vpop.f32.mrf.mxu0 }
  0x91   :  { %v89_v7 = vadd.f32 %v134_v4, %v88_v6 }
  0x93   :  { %v97_v8 = vadd.f32 %v128_v5, %v89_v7 }
  0x95   :  { %v99_v9 = vpack.c.bf16 %v97_v8, %v97_v8 }
  0x97   :  { %102 = vst.msk [vmem:[%s238_s4] sm:$0xf] %vm101_vm1, %v99_v9 }
  0x98   :  { %v90_v11 = vpop.f32.mrf.mxu0 }
  0x99   :  { %v91_v12 = vadd.f32 %v134_v4, %v90_v11 }
  0x9b   :  { %v98_v13 = vadd.f32 %v129_v10, %v91_v12 }
  0x9d   :  { %v100_v14 = vpack.c.bf16 %v98_v13, %v98_v13 }
  0x9f   :  { %103 = vst.msk [vmem:[%s238_s4 + $0x4] sm:$0xf] %vm101_vm1, %v100_v14 }
  0xa0   :  { %108 = vsyncpa [#allocation3], 1 }
  0xa1   :  { %109 = vsyncpa [#allocation5], 1 }

// kernel: ts_transformer_forward.18
= control target key start
LH: loop header
LB: loop body
LE: loop exit
PB: predicated region body
PF: predicated region fallthrough
CT: control target
= control target key end

     0   :  { %vm20_vm0 = vcmask 253952   ;;  %v98_v0 = vmov 0.0   ;;  %vm28_vm1 = vcmask 261120   ;;  %s145_s0 = inlined_call_operand.vmem [shape: bf16[16,32], index: 0, kind: input, shape index: {}]   ;;  %s146_s1 = inlined_call_operand.vmem [shape: f32[1,32], index: 1, kind: input, shape index: {}]   ;;  %s147_s2 = inlined_call_operand.vmem [shape: f32[1,32], index: 2, kind: input, shape index: {}]   ;;  %s148_s3 = inlined_call_operand.vmem [shape: f32[1,32], index: 3, kind: output, shape index: {0}]   ;;  %s149_s4 = inlined_call_operand.vmem [shape: f32[1,32], index: 4, kind: output, shape index: {1}]  }
   0x1   :  { %21 = vst.msk [vmem:[#allocation2] sm:$0x1] %vm20_vm0, %v98_v0  ;;  %v92_v1 = vld [vmem:[%s145_s0] sm:$0xff]  }
   0x2   :  { %22 = vst.msk [vmem:[#allocation3] sm:$0x1] %vm20_vm0, %v98_v0  ;;  %v93_v2 = vunpack.c.l.bf16 %v92_v1  ;;  %v94_v3 = vunpack.c.h.bf16 %v92_v1  ;;  %v65_v41 = vld [vmem:[%s146_s1] sm:$0x1] }
   0x3   :  { %v79_v45 = vld [vmem:[%s147_s2] sm:$0x1] }
   0x4   :  { %v29_v4 = vsel %vm28_vm1, %v93_v2, 0.0  ;;  %v30_v5 = vsel %vm28_vm1, %v94_v3, 0.0  ;;  %v42_v6 = vmul.f32 %v93_v2, %v93_v2  ;;  %v43_v7 = vmul.f32 %v94_v3, %v94_v3 }
   0x5   :  { %v31_v8 = vadd.f32 %v30_v5, %v29_v4 }
   0x6   :  { %v44_v9 = vsel %vm28_vm1, %v42_v6, 0.0  ;;  %v45_v10 = vsel %vm28_vm1, %v43_v7, 0.0 }
   0x7   :  { %v32_v11 = vrot.slane %v31_v8, 4  ;;  %v46_v12 = vadd.f32 %v45_v10, %v44_v9 }
   0x8   :  { %v27_v21 = vld [vmem:[#allocation2] sm:$0x1] }
   0x9   :  { %v33_v13 = vadd.f32 %v32_v11, %v31_v8  ;;  %v47_v14 = vrot.slane %v46_v12, 4  ;;  %v41_v24 = vld [vmem:[#allocation3] sm:$0x1] }
   0xb   :  { %v34_v15 = vrot.slane %v33_v13, 2  ;;  %v48_v16 = vadd.f32 %v47_v14, %v46_v12 }
   0xd   :  { %v35_v17 = vadd.f32 %v34_v15, %v33_v13  ;;  %v49_v18 = vrot.slane %v48_v16, 2 }
   0xf   :  { %v36_v19 = vrot.slane %v35_v17, 1  ;;  %v50_v20 = vadd.f32 %v49_v18, %v48_v16 }
  0x11   :  { %v37_v22 = vadd.f32 %v36_v19, %v35_v17  ;;  %v51_v23 = vrot.slane %v50_v20, 1 }
  0x13   :  { %v38_v25 = vadd.f32 %v37_v22, %v27_v21  ;;  %v52_v26 = vadd.f32 %v51_v23, %v50_v20 }
  0x15   :  { %40 = vst.msk [vmem:[#allocation2] sm:$0x1] %vm20_vm0, %v38_v25  ;;  %v53_v27 = vadd.f32 %v52_v26, %v41_v24 }
  0x17   :  { %54 = vst.msk [vmem:[#allocation3] sm:$0x1] %vm20_vm0, %v53_v27 }
  0x1c   :  { %v58_v28 = vld [vmem:[#allocation2] sm:$0x1] }
  0x1d   :  { %v59_v29 = vmul.f32 0.0625, %v58_v28 }
  0x1e   :  { %v60_v30 = vld [vmem:[#allocation3] sm:$0x1] }
  0x1f   :  { %v61_v31 = vmul.f32 0.0625, %v60_v30  ;;  %v62_v32 = vmul.f32 %v59_v29, %v59_v29 }
  0x21   :  { %v63_v33 = vsub.f32 %v61_v31, %v62_v32 }
  0x23   :  { %v64_v34 = vmax.f32 %v63_v33, 0.0 }
  0x25   :  { %v66_v35 = vadd.f32 1e-05, %v64_v34 }
  0x27   :  { %96 = vrsqrt.f32 %v66_v35  ;;  %vm73_vm3 = vweird.f32 %v66_v35 }
  0x2d   :  { %v97_v36 = vpop.eup %96 }
  0x2e   :  { %v68_v37 = vmul.f32 %v97_v36, %v66_v35  ;;  %vm74_vm2 = vweird.f32 %v97_v36 }
  0x2f   :  { %vm75_vm4 = vmor %vm73_vm3, %vm74_vm2 }
  0x30   :  { %v69_v38 = vmul.f32 %v97_v36, %v68_v37 }
  0x32   :  { %v70_v39 = vmul.f32 0.5, %v69_v38 }
  0x34   :  { %v71_v40 = vsub.f32 1.5, %v70_v39 }
  0x36   :  { %v72_v42 = vmul.f32 %v97_v36, %v71_v40 }
  0x38   :  { %v76_v43 = vsel %vm75_vm4, %v97_v36, %v72_v42 }
  0x39   :  { %v77_v44 = vmul.f32 %v76_v43, %v65_v41 }
  0x3b   :  { %78 = vst.msk [vmem:[%s148_s3] sm:$0x1] %vm20_vm0, %v77_v44  ;;  %v80_v46 = vmul.f32 %v77_v44, %v59_v29 }
  0x3d   :  { %v81_v47 = vsub.f32 %v79_v45, %v80_v46 }
  0x3f   :  { %82 = vst.msk [vmem:[%s149_s4] sm:$0x1] %vm20_vm0, %v81_v47 }

// kernel: ts_transformer_forward.19
= control target key start
LH: loop header
LB: loop body
LE: loop exit
PB: predicated region body
PF: predicated region fallthrough
CT: control target
= control target key end

     0   :  { %12 = vsyncpa [#allocation3], 0  ;;  %s467_s0 = inlined_call_operand.vmem [shape: bf16[16,32], index: 0, kind: input, shape index: {}]   ;;  %s468_s1 = inlined_call_operand.vmem [shape: f32[1,32], index: 1, kind: input, shape index: {}]   ;;  %s469_s2 = inlined_call_operand.vmem [shape: f32[1,32], index: 2, kind: input, shape index: {}]   ;;  %s470_s3 = inlined_call_operand.hbm [shape: bf16[32,64], index: 3, kind: input, shape index: {}]   ;;  %s471_s4 = inlined_call_operand.hbm [shape: f32[1,64], index: 4, kind: input, shape index: {}]   ;;  %s472_s5 = inlined_call_operand.vmem [shape: bf16[64,32], index: 5, kind: input, shape index: {}]   ;;  %s473_s6 = inlined_call_operand.hbm [shape: f32[1,32], index: 6, kind: input, shape index: {}]   ;;  %s474_s7 = inlined_call_operand.vmem [shape: bf16[16,32], index: 7, kind: output, shape index: {}]  }
   0x1   :  { %13 = vsyncpa [#allocation5], 0  ;;  %s38_s26 = sshll.u32 %s471_s4, 4  ;;  %s374_s27 = smov [#allocation4]   ;;  %s39_s26 = int_to_ptr.hbm [resolvable:$true] %s38_s26 }
   0x2   :  { %s40_s28 = sshll.u32 %s374_s27, 4  ;;  %s24_s8 = sshll.u32 %s470_s3, 4  ;;  %s41_s28 = int_to_ptr.vmem [resolvable:$true] %s40_s28  ;;  %s25_s8 = int_to_ptr.hbm [resolvable:$true] %s24_s8 }
   0x3   :  { %43 = dma.hbm_to_vmem [thread:$0]  %s39_s26, 16, %s41_s28, [#allocation5]  }
   0x4   :  { %s375_s9 = smov [#allocation2]   ;;  %s376_s11 = smov 64  }
   0x5   :  { %s26_s10 = sshll.u32 %s375_s9, 4  ;;  %s377_s12 = smov 4   ;;  %s27_s10 = int_to_ptr.vmem [resolvable:$true] %s26_s10 }
   0x6   :  { %32 = dma.hbm_to_vmem [thread:$0]  %s25_s8, 256, %s27_s10, [#allocation3], %s376_s11, %s376_s11, %s377_s12  }
   0x7   :  { %s51_s4 = sshll.u32 %s473_s6, 4  ;;  %s378_s15 = smov [#allocation6]   ;;  %s52_s4 = int_to_ptr.hbm [resolvable:$true] %s51_s4 }
   0x8   :  { %s53_s16 = sshll.u32 %s378_s15, 4  ;;  %s54_s16 = int_to_ptr.vmem [resolvable:$true] %s53_s16 }
   0x9   :  { %56 = dma.hbm_to_vmem [thread:$0]  %s52_s4, 16, %s54_s16, [#allocation5]  }
   0xa   :  { %370 = dma.done.wait [#allocation3], 256  }
   0xb   :  { %371 = vsyncadd [#allocation3], 4294967040 }
   0xc   :  { %372 = dma.done.wait [#allocation5], 32  }
   0xd   :  { %373 = vsyncadd [#allocation5], 4294967264  ;;  %v272_v0 = vld [vmem:[#allocation2 + $0x8] sm:$0xff]  ;;  %v278_v1 = vld [vmem:[%s467_s0] sm:$0xff]   ;;  %vm107_vm0 = vcmask 261120   ;;  %vm214_vm3 = vcmask 523264  }
   0xe   :  { %v279_v2 = vunpack.c.l.bf16 %v278_v1  ;;  %v280_v3 = vunpack.c.h.bf16 %v278_v1  ;;  %v286_v4 = vld [vmem:[%s468_s1] ss:$0 sm:$0xff]  ;;  %117 = vmatpush.bf16.msra.mxu0 %v272_v0  ;;  %v288_v12 = vld [vmem:[#allocation4] ss:$0 sm:$0xff]  ;;  %v276_v19 = vld [vmem:[%s472_s5 + $0x18] sm:$0xff]  ;;  %vm236_vm4 = vcmask 257024  }
   0xf   :  { %v271_v5 = vld [vmem:[#allocation2] sm:$0xff]  ;;  %222 = vmatpush.bf16.msra.mxu1 %v276_v19  ;;  %v275_v23 = vld [vmem:[%s472_s5 + $0x10] sm:$0xff]  ;;  %v274_v26 = vld [vmem:[%s472_s5 + $0x8] sm:$0xff] }
  0x10   :  { %v287_v6 = vld [vmem:[%s469_s2] ss:$0 sm:$0xff]  ;;  %v78_v7 = vmul.f32 %v286_v4, %v279_v2  ;;  %v79_v8 = vmul.f32 %v286_v4, %v280_v3 }
  0x11   :  { %v273_v32 = vld [vmem:[%s472_s5] sm:$0xff] }
  0x12   :  { %v437_v9 = vadd.f32 %v287_v6, %v78_v7  ;;  %v439_v10 = vadd.f32 %v287_v6, %v79_v8  ;;  %118 = vmatpush.bf16.msra.mxu0 %v271_v5  ;;  %v289_v8 = vld [vmem:[#allocation6] ss:$0 sm:$0xff] }
  0x13   :  { %223 = vmatpush.bf16.msra.mxu1 %v275_v23 }
  0x14   :  { %v86_v11 = vpack.c.bf16 %v439_v10, %v437_v9 }
  0x16   :  { %253 = vmatmul.msk.bf16.vlgmr.msra.gmra.mxu0 %vm107_vm0, %v86_v11 }
  0x17   :  { %224 = vmatpush.bf16.msra.mxu1 %v274_v26 }
  0x1b   :  { %225 = vmatpush.bf16.msra.mxu1 %v273_v32 }
  0x93   :  { %v120_v13 = vpop.f32.mrf.mxu0 }
  0x94   :  { %v443_v14 = vadd.f32 %v288_v12, %v120_v13 }
  0x96   :  { %v127_v15 = vmul.f32 0.70710677, %v443_v14  ;;  %v125_v2 = vmul.f32 0.5, %v443_v14 }
  0x98   :  { %v129_v16 = vand.u32 2147483647, %v127_v15  ;;  %vm167_vm1 = vcmp.lt.f32.partialorder %v127_v15, 0.0 }
  0x9a   :  { %v131_v17 = vmul.f32 0.3275911, %v129_v16  ;;  %v155_v28 = vsub.f32 0.0, %v129_v16 }
  0x9b   :  { %v122_v18 = vpop.f32.mrf.mxu0 }
  0x9c   :  { %v133_v20 = vadd.f32 1.0, %v131_v17  ;;  %v123_v21 = vadd.f32 %v288_v12, %v122_v18  ;;  %v157_v33 = vmul.f32 %v155_v28, %v129_v16 }
  0x9e   :  { %290 = vrcp.f32 %v133_v20  ;;  %v128_v22 = vmul.f32 0.70710677, %v123_v21  ;;  %v159_v37 = vmul.f32 1.442695, %v157_v33  ;;  %v126_v3 = vmul.f32 0.5, %v123_v21 }
  0xa0   :  { %v130_v24 = vand.u32 2147483647, %v128_v22  ;;  %vm168_vm2 = vcmp.lt.f32.partialorder %v128_v22, 0.0 }
  0xa2   :  { %v132_v25 = vmul.f32 0.3275911, %v130_v24  ;;  %v156_v38 = vsub.f32 0.0, %v130_v24 }
  0xa4   :  { %v291_v27 = vpop.eup %290  ;;  %v134_v29 = vadd.f32 1.0, %v132_v25  ;;  %v158_v43 = vmul.f32 %v156_v38, %v130_v24 }
  0xa5   :  { %v137_v30 = vmul.f32 1.0614054, %v291_v27 }
  0xa6   :  { %292 = vrcp.f32 %v134_v29  ;;  %v161_v48 = vmul.f32 1.442695, %v158_v43 }
  0xa7   :  { %v139_v31 = vadd.f32 -1.4531521, %v137_v30  ;;  %294 = vpow2.f32 %v159_v37 }
  0xa8   :  { %296 = vpow2.f32 %v161_v48 }
  0xa9   :  { %v141_v34 = vmul.f32 %v291_v27, %v139_v31 }
  0xab   :  { %v143_v35 = vadd.f32 1.4214138, %v141_v34 }
  0xac   :  { %v293_v36 = vpop.eup %292 }
  0xad   :  { %v145_v39 = vmul.f32 %v291_v27, %v143_v35  ;;  %v138_v40 = vmul.f32 1.0614054, %v293_v36  ;;  %v295_v51 = vpop.eup %294 }
  0xae   :  { %v297_v59 = vpop.eup %296 }
  0xaf   :  { %v147_v41 = vadd.f32 -0.28449672, %v145_v39  ;;  %v140_v42 = vadd.f32 -1.4531521, %v138_v40 }
  0xb1   :  { %v149_v44 = vmul.f32 %v291_v27, %v147_v41  ;;  %v142_v45 = vmul.f32 %v293_v36, %v140_v42 }
  0xb3   :  { %v151_v46 = vadd.f32 0.2548296, %v149_v44  ;;  %v144_v47 = vadd.f32 1.4214138, %v142_v45 }
  0xb5   :  { %v153_v49 = vmul.f32 %v291_v27, %v151_v46  ;;  %v146_v50 = vmul.f32 %v293_v36, %v144_v47 }
  0xb7   :  { %v163_v52 = vmul.f32 %v295_v51, %v153_v49  ;;  %v148_v53 = vadd.f32 -0.28449672, %v146_v50 }
  0xb9   :  { %v165_v54 = vsub.f32 1.0, %v163_v52  ;;  %v150_v55 = vmul.f32 %v293_v36, %v148_v53 }
  0xbb   :  { %v152_v56 = vadd.f32 0.2548296, %v150_v55  ;;  %v169_v57 = vsub.f32 0.0, %v165_v54 }
  0xbd   :  { %v154_v58 = vmul.f32 %v293_v36, %v152_v56  ;;  %v171_v61 = vsel %vm167_vm1, %v169_v57, %v165_v54 }
  0xbe   :  { %v173_v0 = vadd.f32 1.0, %v171_v61 }
  0xbf   :  { %v164_v60 = vmul.f32 %v297_v59, %v154_v58 }
  0xc0   :  { %v175_v5 = vmul.f32 %v173_v0, %v125_v2 }
  0xc1   :  { %v166_v62 = vsub.f32 1.0, %v164_v60 }
  0xc3   :  { %v170_v63 = vsub.f32 0.0, %v166_v62 }
  0xc5   :  { %v172_v1 = vsel %vm168_vm2, %v170_v63, %v166_v62 }
  0xc6   :  { %v174_v4 = vadd.f32 1.0, %v172_v1 }
  0xc8   :  { %v176_v6 = vmul.f32 %v174_v4, %v126_v3 }
  0xca   :  { %v177_v7 = vpack.c.bf16 %v176_v6, %v175_v5 }
  0xcc   :  { %270 = vmatmul.msk.bf16.vlgmr.msra.gmra.mxu1 %vm214_vm3, %v177_v7 }
 0x149   :  { %v227_v11 = vpop.f32.mrf.mxu1 }
 0x14a   :  { %v228_v12 = vadd.f32 %v289_v8, %v227_v11 }
 0x14c   :  { %v232_v13 = vadd.f32 %v228_v12, %v437_v9 }
 0x14e   :  { %v234_v15 = vpack.c.bf16 %v232_v13, %v232_v13 }
 0x150   :  { %237 = vst.msk [vmem:[%s474_s7] sm:$0xf] %vm236_vm4, %v234_v15 }
 0x151   :  { %v229_v16 = vpop.f32.mrf.mxu1 }
 0x152   :  { %v230_v14 = vadd.f32 %v289_v8, %v229_v16 }
 0x154   :  { %v233_v17 = vadd.f32 %v230_v14, %v439_v10 }
 0x156   :  { %v235_v18 = vpack.c.bf16 %v233_v17, %v233_v17 }
 0x158   :  { %238 = vst.msk [vmem:[%s474_s7 + $0x4] sm:$0xf] %vm236_vm4, %v235_v18 }
 0x159   :  { %243 = vsyncpa [#allocation3], 1 }
 0x15a   :  { %244 = vsyncpa [#allocation5], 1 }

// kernel: ts_transformer_forward.21
= control target key start
LH: loop header
LB: loop body
LE: loop exit
PB: predicated region body
PF: predicated region fallthrough
CT: control target
= control target key end

     0   :  { %14 = vsyncpa [#allocation3], 0  ;;  %s420_s0 = inlined_call_operand.vmem [shape: bf16[16,32], index: 0, kind: input, shape index: {}]   ;;  %s421_s1 = inlined_call_operand.vmem [shape: f32[1,32], index: 1, kind: input, shape index: {}]   ;;  %s422_s2 = inlined_call_operand.vmem [shape: f32[1,32], index: 2, kind: input, shape index: {}]   ;;  %s423_s3 = inlined_call_operand.hbm [shape: bf16[32,32], index: 3, kind: input, shape index: {}]   ;;  %s424_s4 = inlined_call_operand.hbm [shape: f32[1,32], index: 4, kind: input, shape index: {}]   ;;  %s425_s5 = inlined_call_operand.hbm [shape: bf16[32,64], index: 5, kind: input, shape index: {}]   ;;  %s426_s6 = inlined_call_operand.hbm [shape: f32[1,64], index: 6, kind: input, shape index: {}]   ;;  %s427_s7 = inlined_call_operand.vmem [shape: bf16[16,32], index: 7, kind: output, shape index: {0}]   ;;  %s428_s8 = inlined_call_operand.vmem [shape: bf16[16,64], index: 8, kind: output, shape index: {1}]  }
   0x1   :  { %15 = vsyncpa [#allocation5], 0  ;;  %s41_s29 = sshll.u32 %s424_s4, 4  ;;  %s42_s29 = int_to_ptr.hbm [resolvable:$true] %s41_s29 }
   0x2   :  { %16 = vsyncpa [#allocation8], 0  ;;  %s336_s30 = smov [#allocation4]   ;;  %s27_s12 = sshll.u32 %s423_s3, 4  ;;  %s28_s12 = int_to_ptr.hbm [resolvable:$true] %s27_s12 }
   0x3   :  { %s43_s9 = sshll.u32 %s336_s30, 4  ;;  %s337_s13 = smov [#allocation2]   ;;  %s44_s9 = int_to_ptr.vmem [resolvable:$true] %s43_s9 }
   0x4   :  { %46 = dma.hbm_to_vmem [thread:$0]  %s42_s29, 16, %s44_s9, [#allocation5]  }
   0x5   :  { %s29_s14 = sshll.u32 %s337_s13, 4  ;;  %s338_s15 = smov 64   ;;  %s30_s14 = int_to_ptr.vmem [resolvable:$true] %s29_s14 }
   0x6   :  { %s339_s16 = smov 4   ;;  %s51_s4 = sshll.u32 %s425_s5, 4  ;;  %s52_s4 = int_to_ptr.hbm [resolvable:$true] %s51_s4 }
   0x7   :  { %35 = dma.hbm_to_vmem [thread:$0]  %s28_s12, 256, %s30_s14, [#allocation3], %s338_s15, %s338_s15, %s339_s16  }
   0x8   :  { %s340_s19 = smov [#allocation6]   ;;  %s65_s3 = sshll.u32 %s426_s6, 4  ;;  %s66_s3 = int_to_ptr.hbm [resolvable:$true] %s65_s3 }
   0x9   :  { %s53_s20 = sshll.u32 %s340_s19, 4  ;;  %s341_s23 = smov [#allocation7]   ;;  %s54_s20 = int_to_ptr.vmem [resolvable:$true] %s53_s20 }
   0xa   :  { %59 = dma.hbm_to_vmem [thread:$0]  %s52_s4, 256, %s54_s20, [#allocation5], %s338_s15, %s338_s15, %s339_s16  }
   0xb   :  { %s67_s24 = sshll.u32 %s341_s23, 4  ;;  %s68_s24 = int_to_ptr.vmem [resolvable:$true] %s67_s24 }
   0xc   :  { %70 = dma.hbm_to_vmem [thread:$0]  %s66_s3, 16, %s68_s24, [#allocation8]  }
   0xd   :  { %330 = dma.done.wait [#allocation3], 256  }
   0xe   :  { %331 = vsyncadd [#allocation3], 4294967040 }
   0xf   :  { %332 = dma.done.wait [#allocation5], 272  }
  0x10   :  { %333 = vsyncadd [#allocation5], 4294967024 }
  0x11   :  { %334 = dma.done.wait [#allocation8], 16  }
  0x12   :  { %335 = vsyncadd [#allocation8], 4294967280  ;;  %v217_v0 = vld [vmem:[#allocation2 + $0x8] sm:$0xff]  ;;  %v219_v1 = vld [vmem:[#allocation6 + $0x8] sm:$0xff]  ;;  %vm125_vm0 = vcmask 261120   ;;  %vm179_vm1 = vcmask 257024  }
  0x13   :  { %v216_v2 = vld [vmem:[#allocation2] sm:$0xff]  ;;  %v218_v3 = vld [vmem:[#allocation6] sm:$0xff]  ;;  %135 = vmatpush.bf16.msra.mxu0 %v217_v0  ;;  %169 = vmatpush.bf16.msra.mxu1 %v219_v1  ;;  %v232_v14 = vld [vmem:[#allocation4] ss:$0 sm:$0xff]  ;;  %vm184_vm2 = vcmask 519168  }
  0x14   :  { %v221_v4 = vld [vmem:[%s420_s0] sm:$0xff]  }
  0x15   :  { %v222_v5 = vunpack.c.l.bf16 %v221_v4  ;;  %v223_v6 = vunpack.c.h.bf16 %v221_v4  ;;  %v230_v7 = vld [vmem:[%s421_s1] ss:$0 sm:$0xff]  ;;  %v233_v15 = vld [vmem:[#allocation7] ss:$0 sm:$0xff] }
  0x16   :  { %v231_v8 = vld [vmem:[%s422_s2] ss:$0 sm:$0xff] }
  0x17   :  { %v96_v9 = vmul.f32 %v230_v7, %v222_v5  ;;  %v97_v10 = vmul.f32 %v230_v7, %v223_v6  ;;  %136 = vmatpush.bf16.msra.mxu0 %v216_v2  ;;  %170 = vmatpush.bf16.msra.mxu1 %v218_v3 }
  0x19   :  { %v102_v11 = vadd.f32 %v231_v8, %v96_v9  ;;  %v103_v12 = vadd.f32 %v231_v8, %v97_v10 }
  0x1b   :  { %v104_v13 = vpack.c.bf16 %v103_v12, %v102_v11 }
  0x1d   :  { %206 = vmatmul.msk.bf16.vlgmr.msra.gmra.mxu0 %vm125_vm0, %v104_v13  ;;  %215 = vmatmul.msk.bf16.vlgmr.msra.gmra.mxu1 %vm125_vm0, %v104_v13 }
  0x9a   :  { %v138_v16 = vpop.f32.mrf.mxu0  ;;  %v172_v17 = vpop.f32.mrf.mxu1 }
  0x9b   :  { %v139_v18 = vadd.f32 %v232_v14, %v138_v16  ;;  %v173_v19 = vadd.f32 %v233_v15, %v172_v17 }
  0x9d   :  { %v177_v20 = vpack.c.bf16 %v139_v18, %v139_v18  ;;  %v182_v21 = vpack.c.bf16 %v173_v19, %v173_v19 }
  0x9f   :  { %180 = vst.msk [vmem:[%s427_s7] sm:$0xf] %vm179_vm1, %v177_v20 }
  0xa0   :  { %185 = vst.msk [vmem:[%s428_s8] sm:$0xf] %vm184_vm2, %v182_v21 }
  0xa2   :  { %v140_v22 = vpop.f32.mrf.mxu0  ;;  %v174_v23 = vpop.f32.mrf.mxu1 }
  0xa3   :  { %v141_v24 = vadd.f32 %v232_v14, %v140_v22  ;;  %v175_v25 = vadd.f32 %v233_v15, %v174_v23 }
  0xa5   :  { %v178_v26 = vpack.c.bf16 %v141_v24, %v141_v24  ;;  %v183_v27 = vpack.c.bf16 %v175_v25, %v175_v25 }
  0xa7   :  { %181 = vst.msk [vmem:[%s427_s7 + $0x4] sm:$0xf] %vm179_vm1, %v178_v26 }
  0xa8   :  { %186 = vst.msk [vmem:[%s428_s8 + $0x4] sm:$0xf] %vm184_vm2, %v183_v27 }
  0xa9   :  { %195 = vsyncpa [#allocation3], 1 }
  0xaa   :  { %196 = vsyncpa [#allocation5], 1 }
  0xab   :  { %197 = vsyncpa [#allocation8], 1 }

// kernel: ts_transformer_forward.27
= control target key start
LH: loop header
LB: loop body
LE: loop exit
PB: predicated region body
PF: predicated region fallthrough
CT: control target
= control target key end

     0   :  { %10 = vsyncpa [#allocation3], 0  ;;  %s207_s21 = smov [#allocation2]   ;;  %s208_s23 = smov 64   ;;  %s261_s0 = inlined_call_operand.vmem [shape: bf16[16,32], index: 0, kind: input, shape index: {}]   ;;  %s262_s1 = inlined_call_operand.vmem [shape: f32[1,32], index: 1, kind: input, shape index: {}]   ;;  %s263_s2 = inlined_call_operand.vmem [shape: f32[1,32], index: 2, kind: input, shape index: {}]   ;;  %s264_s3 = inlined_call_operand.hbm [shape: bf16[32,4], index: 3, kind: input, shape index: {}]   ;;  %s265_s4 = inlined_call_operand.vmem [shape: f32[1,4], index: 4, kind: input, shape index: {}]   ;;  %s266_s5 = inlined_call_operand.vmem [shape: f32[16,4], index: 5, kind: output, shape index: {}]  }
   0x1   :  { %s21_s20 = sshll.u32 %s264_s3, 4  ;;  %s23_s22 = sshll.u32 %s207_s21, 4  ;;  %s22_s20 = int_to_ptr.hbm [resolvable:$true] %s21_s20  ;;  %s24_s22 = int_to_ptr.vmem [resolvable:$true] %s23_s22 }
   0x2   :  { %s209_s24 = smov 4  }
   0x3   :  { %29 = dma.hbm_to_vmem [thread:$0]  %s22_s20, 256, %s24_s22, [#allocation3], %s208_s23, %s208_s23, %s209_s24  }
   0x4   :  { %205 = dma.done.wait [#allocation3], 256  }
   0x5   :  { %206 = vsyncadd [#allocation3], 4294967040  ;;  %v162_v0 = vld [vmem:[#allocation2 + $0x8] sm:$0xff]  ;;  %v164_v1 = vld [vmem:[%s261_s0] sm:$0xff]   ;;  %vm126_vm2 = vcmask 261120   ;;  %vm144_vm3 = vcmask 31744  }
   0x6   :  { %v165_v2 = vunpack.c.l.bf16 %v164_v1  ;;  %v166_v3 = vunpack.c.h.bf16 %v164_v1  ;;  %v170_v4 = vld [vmem:[%s262_s1] ss:$0 sm:$0xff]  ;;  %136 = vmatpush.bf16.msra.mxu0 %v162_v0 }
   0x7   :  { %v161_v5 = vld [vmem:[#allocation2] sm:$0xff] }
   0x8   :  { %v171_v6 = vld [vmem:[%s263_s2] ss:$0 sm:$0xff]  ;;  %v45_v7 = vmul.f32 %v170_v4, %v165_v2  ;;  %v46_v8 = vmul.f32 %v170_v4, %v166_v3 }
   0x9   :  { %v172_v62 = vld [vmem:[%s265_s4] ss:$0 sm:$0xff] }
   0xa   :  { %v51_v9 = vadd.f32 %v171_v6, %v45_v7  ;;  %v52_v10 = vadd.f32 %v171_v6, %v46_v8  ;;  %137 = vmatpush.bf16.msra.mxu0 %v161_v5 }
   0xc   :  { %v55_v11 = vmul.f32 0.70710677, %v51_v9  ;;  %v56_v12 = vmul.f32 0.70710677, %v52_v10  ;;  %v53_v52 = vmul.f32 0.5, %v51_v9  ;;  %v54_v54 = vmul.f32 0.5, %v52_v10 }
   0xe   :  { %v57_v13 = vand.u32 2147483647, %v55_v11  ;;  %v58_v14 = vand.u32 2147483647, %v56_v12  ;;  %vm95_vm0 = vcmp.lt.f32.partialorder %v55_v11, 0.0  ;;  %vm96_vm1 = vcmp.lt.f32.partialorder %v56_v12, 0.0 }
  0x10   :  { %v59_v15 = vmul.f32 0.3275911, %v57_v13  ;;  %v60_v16 = vmul.f32 0.3275911, %v58_v14  ;;  %v83_v19 = vsub.f32 0.0, %v57_v13  ;;  %v84_v20 = vsub.f32 0.0, %v58_v14 }
  0x12   :  { %v61_v17 = vadd.f32 1.0, %v59_v15  ;;  %v62_v18 = vadd.f32 1.0, %v60_v16  ;;  %v85_v25 = vmul.f32 %v83_v19, %v57_v13  ;;  %v86_v27 = vmul.f32 %v84_v20, %v58_v14 }
  0x14   :  { %173 = vrcp.f32 %v61_v17  ;;  %v87_v31 = vmul.f32 1.442695, %v85_v25  ;;  %v89_v33 = vmul.f32 1.442695, %v86_v27 }
  0x15   :  { %175 = vrcp.f32 %v62_v18 }
  0x16   :  { %177 = vpow2.f32 %v87_v31 }
  0x17   :  { %179 = vpow2.f32 %v89_v33 }
  0x1a   :  { %v174_v21 = vpop.eup %173 }
  0x1b   :  { %v176_v22 = vpop.eup %175  ;;  %v65_v23 = vmul.f32 1.0614054, %v174_v21 }
  0x1c   :  { %v66_v24 = vmul.f32 1.0614054, %v176_v22  ;;  %v178_v42 = vpop.eup %177 }
  0x1d   :  { %v67_v26 = vadd.f32 -1.4531521, %v65_v23  ;;  %v180_v44 = vpop.eup %179 }
  0x1e   :  { %v68_v28 = vadd.f32 -1.4531521, %v66_v24 }
  0x1f   :  { %v69_v29 = vmul.f32 %v174_v21, %v67_v26 }
  0x20   :  { %v70_v30 = vmul.f32 %v176_v22, %v68_v28 }
  0x21   :  { %v71_v32 = vadd.f32 1.4214138, %v69_v29 }
  0x22   :  { %v72_v34 = vadd.f32 1.4214138, %v70_v30 }
  0x23   :  { %v73_v35 = vmul.f32 %v174_v21, %v71_v32 }
  0x24   :  { %v74_v36 = vmul.f32 %v176_v22, %v72_v34 }
  0x25   :  { %v75_v37 = vadd.f32 -0.28449672, %v73_v35 }
  0x26   :  { %v76_v38 = vadd.f32 -0.28449672, %v74_v36 }
  0x27   :  { %v77_v39 = vmul.f32 %v174_v21, %v75_v37 }
  0x28   :  { %v78_v40 = vmul.f32 %v176_v22, %v76_v38 }
  0x29   :  { %v79_v41 = vadd.f32 0.2548296, %v77_v39 }
  0x2a   :  { %v80_v43 = vadd.f32 0.2548296, %v78_v40 }
  0x2b   :  { %v81_v45 = vmul.f32 %v174_v21, %v79_v41 }
  0x2c   :  { %v82_v46 = vmul.f32 %v176_v22, %v80_v43 }
  0x2d   :  { %v91_v47 = vmul.f32 %v178_v42, %v81_v45 }
  0x2e   :  { %v92_v48 = vmul.f32 %v180_v44, %v82_v46 }
  0x2f   :  { %v93_v49 = vsub.f32 1.0, %v91_v47 }
  0x30   :  { %v94_v50 = vsub.f32 1.0, %v92_v48 }
  0x31   :  { %v97_v51 = vsub.f32 0.0, %v93_v49 }
  0x32   :  { %v98_v53 = vsub.f32 0.0, %v94_v50 }
  0x33   :  { %v99_v55 = vsel %vm95_vm0, %v97_v51, %v93_v49 }
  0x34   :  { %v100_v56 = vsel %vm96_vm1, %v98_v53, %v94_v50  ;;  %v101_v57 = vadd.f32 1.0, %v99_v55 }
  0x35   :  { %v102_v58 = vadd.f32 1.0, %v100_v56 }
  0x36   :  { %v103_v59 = vmul.f32 %v101_v57, %v53_v52 }
  0x37   :  { %v104_v60 = vmul.f32 %v102_v58, %v54_v54 }
  0x39   :  { %v105_v61 = vpack.c.bf16 %v104_v60, %v103_v59 }
  0x3b   :  { %160 = vmatmul.msk.bf16.vlgmr.msra.gmra.mxu0 %vm126_vm2, %v105_v61 }
  0xb8   :  { %v139_v63 = vpop.f32.mrf.mxu0 }
  0xb9   :  { %v140_v0 = vadd.f32 %v172_v62, %v139_v63 }
  0xbb   :  { %145 = vst.msk [vmem:[%s266_s5] sm:$0xff] %vm144_vm3, %v140_v0 }
  0xc0   :  { %v141_v1 = vpop.f32.mrf.mxu0 }
  0xc1   :  { %v142_v2 = vadd.f32 %v172_v62, %v141_v1 }
  0xc3   :  { %146 = vst.msk [vmem:[%s266_s5 + $0x8] sm:$0xff] %vm144_vm3, %v142_v2 }
  0xc4   :  { %151 = vsyncpa [#allocation3], 1 }

// kernel: ts_transformer_forward.23
= control target key start
LH: loop header
LB: loop body
LE: loop exit
PB: predicated region body
PF: predicated region fallthrough
CT: control target
= control target key end

     0   :  { %11 = vsyncpa [#allocation3], 0  ;;  %s270_s0 = inlined_call_operand.vmem [shape: bf16[16,32], index: 0, kind: input, shape index: {}]   ;;  %s271_s1 = inlined_call_operand.hbm [shape: bf16[32,32], index: 1, kind: input, shape index: {}]   ;;  %s272_s2 = inlined_call_operand.hbm [shape: f32[1,32], index: 2, kind: input, shape index: {}]   ;;  %s273_s3 = inlined_call_operand.vmem [shape: bf16[16,32], index: 3, kind: input, shape index: {}]   ;;  %s274_s4 = inlined_call_operand.vmem [shape: f32[1,32], index: 4, kind: input, shape index: {}]   ;;  %s275_s5 = inlined_call_operand.vmem [shape: f32[1,32], index: 5, kind: input, shape index: {}]   ;;  %s276_s6 = inlined_call_operand.vmem [shape: bf16[16,32], index: 6, kind: output, shape index: {}]  }
   0x1   :  { %s19_s23 = sshll.u32 %s271_s1, 4  ;;  %s20_s23 = int_to_ptr.hbm [resolvable:$true] %s19_s23 }
   0x2   :  { %12 = vsyncpa [#allocation5], 0  ;;  %s207_s24 = smov [#allocation2]   ;;  %s33_s28 = sshll.u32 %s272_s2, 4  ;;  %s34_s28 = int_to_ptr.hbm [resolvable:$true] %s33_s28 }
   0x3   :  { %s21_s25 = sshll.u32 %s207_s24, 4  ;;  %s208_s29 = smov 64   ;;  %s22_s25 = int_to_ptr.vmem [resolvable:$true] %s21_s25 }
   0x4   :  { %s209_s30 = smov 4   ;;  %s210_s7 = smov [#allocation4]  }
   0x5   :  { %27 = dma.hbm_to_vmem [thread:$0]  %s20_s23, 256, %s22_s25, [#allocation3], %s208_s29, %s208_s29, %s209_s30  }
   0x6   :  { %s35_s8 = sshll.u32 %s210_s7, 4  ;;  %s36_s8 = int_to_ptr.vmem [resolvable:$true] %s35_s8 }
   0x7   :  { %38 = dma.hbm_to_vmem [thread:$0]  %s34_s28, 16, %s36_s8, [#allocation5]  }
   0x8   :  { %203 = dma.done.wait [#allocation3], 256  }
   0x9   :  { %204 = vsyncadd [#allocation3], 4294967040 }
   0xa   :  { %205 = dma.done.wait [#allocation5], 16  }
   0xb   :  { %206 = vsyncadd [#allocation5], 4294967280  ;;  %v143_v0 = vld [vmem:[#allocation2 + $0x8] sm:$0xff]  ;;  %v142_v1 = vld [vmem:[#allocation2] sm:$0xff]  ;;  %vm81_vm0 = vcmask 261120   ;;  %vm119_vm1 = vcmask 257024  }
   0xc   :  { %91 = vmatpush.bf16.msra.mxu0 %v143_v0  ;;  %v141_v2 = vld [vmem:[%s270_s0] sm:$0xff]  ;;  %v152_v8 = vld [vmem:[#allocation4] ss:$0 sm:$0xff] }
   0xd   :  { %v145_v3 = vld [vmem:[%s273_s3] sm:$0xff]  }
   0xe   :  { %v146_v4 = vunpack.c.l.bf16 %v145_v3  ;;  %v153_v5 = vld [vmem:[%s274_s4] ss:$0 sm:$0xff]  ;;  %v147_v10 = vunpack.c.h.bf16 %v145_v3 }
   0xf   :  { %v154_v7 = vld [vmem:[%s275_s5] ss:$0 sm:$0xff] }
  0x10   :  { %92 = vmatpush.bf16.msra.mxu0 %v142_v1  ;;  %v107_v6 = vmul.f32 %v153_v5, %v146_v4  ;;  %v108_v14 = vmul.f32 %v153_v5, %v147_v10 }
  0x12   :  { %v113_v9 = vadd.f32 %v154_v7, %v107_v6  ;;  %v114_v16 = vadd.f32 %v154_v7, %v108_v14 }
  0x13   :  { %140 = vmatmul.msk.bf16.vlgmr.msra.gmra.mxu0 %vm81_vm0, %v141_v2 }
  0x90   :  { %v94_v11 = vpop.f32.mrf.mxu0 }
  0x91   :  { %v95_v12 = vadd.f32 %v152_v8, %v94_v11 }
  0x93   :  { %v115_v13 = vadd.f32 %v113_v9, %v95_v12 }
  0x95   :  { %v117_v15 = vpack.c.bf16 %v115_v13, %v115_v13 }
  0x97   :  { %120 = vst.msk [vmem:[%s276_s6] sm:$0xf] %vm119_vm1, %v117_v15 }
  0x98   :  { %v96_v17 = vpop.f32.mrf.mxu0 }
  0x99   :  { %v97_v18 = vadd.f32 %v152_v8, %v96_v17 }
  0x9b   :  { %v116_v19 = vadd.f32 %v114_v16, %v97_v18 }
  0x9d   :  { %v118_v20 = vpack.c.bf16 %v116_v19, %v116_v19 }
  0x9f   :  { %121 = vst.msk [vmem:[%s276_s6 + $0x4] sm:$0xf] %vm119_vm1, %v118_v20 }
  0xa0   :  { %126 = vsyncpa [#allocation3], 1 }
  0xa1   :  { %127 = vsyncpa [#allocation5], 1 }

</bundles_post_ra>
